<compile_context>
chip_gen: v5e
topology: v5e:2x2
jax: 0.10.0
libtpu: 0.0.40
codegen_flags: <defaults>
</compile_context>

<pallas_src>
import functools

import jax
import jax.numpy as jnp
from jax.experimental import pallas as pl
from jax.experimental.pallas import tpu as pltpu

INPUT_DIM = 64          # forced by x.reshape(-1, 64) in the reference forward
H1, H2, H3 = 1024, 512, 256
OUTPUT_DIM = 10         # synthetic choice for output_dim
OUT_PAD = 128           # lane-dense padded output width (sliced back to 10)


def _round_up(x, n):
    return ((x + n - 1) // n) * n


def _tanh_in_f32_for_backend():
    """v5e (and older) have no bf16 VPU/EUP -> compute tanh in f32 there."""
    try:
        kind = jax.devices()[0].device_kind.lower()
    except Exception:
        return False
    return ("v6" not in kind) and ("v7" not in kind)


def _mlp_kernel(x_ref, w1_ref, b1_ref, w2_ref, b2_ref, w3_ref, b3_ref,
                w4_ref, b4_ref, o_ref, *, tanh_in_f32):
    # bf16 MXU operands, f32 accumulation (preferred_element_type), f32 bias.
    x = x_ref[...].astype(jnp.bfloat16)                    # in-kernel cast

    def act(h):
        if tanh_in_f32:
            # v5e path: tanh on f32 (no bf16 EUP), cast only for next matmul.
            return jnp.tanh(h).astype(jnp.bfloat16)
        # v6e/v7x path: bf16 EUP tanh.
        return jnp.tanh(h.astype(jnp.bfloat16))

    h = jnp.dot(x, w1_ref[...], preferred_element_type=jnp.float32) + b1_ref[...]
    h = act(h)
    h = jnp.dot(h, w2_ref[...], preferred_element_type=jnp.float32) + b2_ref[...]
    h = act(h)
    h = jnp.dot(h, w3_ref[...], preferred_element_type=jnp.float32) + b3_ref[...]
    h = act(h)
    y = jnp.dot(h, w4_ref[...], preferred_element_type=jnp.float32) + b4_ref[...]
    o_ref[...] = y.astype(o_ref.dtype)                      # [tm, 128]


def prepare_params(params):
    """One-time preprocessing (hoisted out of the forward): bf16 weights,
    last layer zero-padded to OUT_PAD lanes.  Biases stay f32."""
    w1, b1, w2, b2, w3, b3, w4, b4 = params
    w1b = w1.astype(jnp.bfloat16)
    w2b = w2.astype(jnp.bfloat16)
    w3b = w3.astype(jnp.bfloat16)
    w4p = jnp.pad(w4.astype(jnp.bfloat16), ((0, 0), (0, OUT_PAD - OUTPUT_DIM)))
    b4p = jnp.pad(b4, ((0, 0), (0, OUT_PAD - OUTPUT_DIM)))
    return (w1b, b1, w2b, b2, w3b, b3, w4p, b4p)


def dnn_forward(x, prepared_params, *, tile_m=1024, out_dtype=jnp.float32):
    """Pallas implementation of DNN.forward: net(x.reshape(-1, 64))."""
    w1, b1, w2, b2, w3, b3, w4, b4 = prepared_params
    x2d = x.reshape(-1, INPUT_DIM)                          # f32, fed directly
    m = x2d.shape[0]

    # Guard the tiny-batch edge case (block row dim must stay >= 8 rows).
    m_rows = m
    if m < 8:
        x2d = jnp.pad(x2d, ((0, 8 - m), (0, 0)))
        m_rows = 8

    # Row tile: big (amortizes ~0.35us/step overhead) but capped to half the
    # 8-aligned rows so the grid always has >= 2 steps -> both v7x TCs busy.
    half_rows = _round_up(pl.cdiv(m_rows, 2), 8)
    tm = max(8, min(tile_m, half_rows))
    grid_m = pl.cdiv(m_rows, tm)                            # partial tail block OK

    weight_bytes = (2 * (INPUT_DIM * H1 + H1 * H2 + H2 * H3 + H3 * OUT_PAD)
                    + 4 * (H1 + H2 + H3 + OUT_PAD))
    cost = pl.CostEstimate(
        flops=2 * m_rows * (INPUT_DIM * H1 + H1 * H2 + H2 * H3 + H3 * OUT_PAD),
        transcendentals=m_rows * (H1 + H2 + H3),
        bytes_accessed=m_rows * (INPUT_DIM * 4 + OUT_PAD * 4) + weight_bytes,
    )

    full = lambda shape: pl.BlockSpec(shape, lambda i: (0, 0))  # grid-invariant
    kernel = functools.partial(_mlp_kernel,
                               tanh_in_f32=_tanh_in_f32_for_backend())

    out = pl.pallas_call(
        kernel,
        out_shape=jax.ShapeDtypeStruct((m_rows, OUT_PAD), out_dtype),
        grid_spec=pltpu.PrefetchScalarGridSpec(
            num_scalar_prefetch=0,
            grid=(grid_m,),
            in_specs=[
                pl.BlockSpec((tm, INPUT_DIM), lambda i: (i, 0)),  # x row tile
                full((INPUT_DIM, H1)), full((1, H1)),
                full((H1, H2)),        full((1, H2)),
                full((H2, H3)),        full((1, H3)),
                full((H3, OUT_PAD)),   full((1, OUT_PAD)),
            ],
            out_specs=pl.BlockSpec((tm, OUT_PAD), lambda i: (i, 0)),
        ),
        compiler_params=pltpu.CompilerParams(
            dimension_semantics=("parallel",),        # rows shard over v7x's 2 TCs
            vmem_limit_bytes=48 * 1024 * 1024,        # headroom for tm=1024 temps
        ),
        cost_estimate=cost,
    )(x2d, w1, b1, w2, b2, w3, b3, w4, b4)
    # Discard padded/garbage tail rows and padded lanes (nothing else reads them).
    return out[:m, :OUTPUT_DIM]


def init_params(key):
    """Deterministic synthetic parameters matching nn.Linear shapes
    (stored transposed: [in, out]), f32 master copies."""
    dims = [(INPUT_DIM, H1), (H1, H2), (H2, H3), (H3, OUTPUT_DIM)]
    params = []
    for (din, dout) in dims:
        key, kw, kb = jax.random.split(key, 3)
        bound = 1.0 / jnp.sqrt(din)
        w = jax.random.uniform(kw, (din, dout), jnp.float32, -bound, bound)
        b = jax.random.uniform(kb, (1, dout), jnp.float32, -bound, bound)
        params += [w, b]
    return tuple(params)


def dnn_reference(x, params):
    """Plain-JAX f32 reference of the same forward pass."""
    w1, b1, w2, b2, w3, b3, w4, b4 = params
    h = x.reshape(-1, INPUT_DIM)
    h = jnp.tanh(h @ w1 + b1)
    h = jnp.tanh(h @ w2 + b2)
    h = jnp.tanh(h @ w3 + b3)
    return h @ w4 + b4


if __name__ == "__main__":
    key = jax.random.PRNGKey(0)
    key, kx1, kx2 = jax.random.split(key, 3)
    params = init_params(key)            # f32 masters (used by the reference)
    prepared = prepare_params(params)    # one-time bf16 cast + lane padding

    # Case 1: flattened size multiple of 64 -> 16 rows (grid of 2 tiles).
    x1 = jax.random.normal(kx1, (2, 8, 64), jnp.float32)
    y1 = jax.block_until_ready(dnn_forward(x1, prepared))
    y1_ref = dnn_reference(x1, params)
    assert y1.shape == (16, OUTPUT_DIM)
    assert jnp.allclose(y1, y1_ref, atol=3e-2, rtol=3e-2)

    # Case 2: row count not a multiple of 8 (exercises the partial tail block).
    x2 = jax.random.normal(kx2, (10, 64), jnp.float32)
    y2 = jax.block_until_ready(dnn_forward(x2, prepared))
    y2_ref = dnn_reference(x2, params)
    assert y2.shape == (10, OUTPUT_DIM)
    assert jnp.allclose(y2, y2_ref, atol=3e-2, rtol=3e-2)

    print("KERNEL_OK")
</pallas_src>

<mosaic_0001>
module attributes {stable_mosaic.version = 11 : i64} {
  func.func @_mlp_kernel(%arg0: i32, %arg1: memref<8x64xf32, #tpu.memory_space<vmem>>, %arg2: memref<64x1024xbf16, #tpu.memory_space<vmem>>, %arg3: memref<1x1024xf32, #tpu.memory_space<vmem>>, %arg4: memref<1024x512xbf16, #tpu.memory_space<vmem>>, %arg5: memref<1x512xf32, #tpu.memory_space<vmem>>, %arg6: memref<512x256xbf16, #tpu.memory_space<vmem>>, %arg7: memref<1x256xf32, #tpu.memory_space<vmem>>, %arg8: memref<256x128xbf16, #tpu.memory_space<vmem>>, %arg9: memref<1x128xf32, #tpu.memory_space<vmem>>, %arg10: memref<8x128xf32, #tpu.memory_space<vmem>>) attributes {dimension_semantics = [#tpu.dimension_semantics<parallel>], iteration_bounds = array<i64: 2>, scalar_prefetch = 0 : i64, scratch_operands = 0 : i64, tpu.core_type = #tpu.core_type<tc>, window_params = [{transform_indices = @transform_0, window_bounds = array<i64: 8, 64>}, {pipeline_mode = #tpu.pipeline_mode<synchronous>, transform_indices = @transform_1, window_bounds = array<i64: 64, 1024>}, {pipeline_mode = #tpu.pipeline_mode<synchronous>, transform_indices = @transform_2, window_bounds = array<i64: 1, 1024>}, {pipeline_mode = #tpu.pipeline_mode<synchronous>, transform_indices = @transform_3, window_bounds = array<i64: 1024, 512>}, {pipeline_mode = #tpu.pipeline_mode<synchronous>, transform_indices = @transform_4, window_bounds = array<i64: 1, 512>}, {pipeline_mode = #tpu.pipeline_mode<synchronous>, transform_indices = @transform_5, window_bounds = array<i64: 512, 256>}, {pipeline_mode = #tpu.pipeline_mode<synchronous>, transform_indices = @transform_6, window_bounds = array<i64: 1, 256>}, {pipeline_mode = #tpu.pipeline_mode<synchronous>, transform_indices = @transform_7, window_bounds = array<i64: 256, 128>}, {pipeline_mode = #tpu.pipeline_mode<synchronous>, transform_indices = @transform_8, window_bounds = array<i64: 1, 128>}, {transform_indices = @transform_9, window_bounds = array<i64: 8, 128>}]} {
    %c0 = arith.constant 0 : index
    %c0_0 = arith.constant 0 : index
    %0 = vector.load %arg1[%c0, %c0_0] : memref<8x64xf32, #tpu.memory_space<vmem>>, vector<8x64xf32>
    %1 = arith.truncf %0 : vector<8x64xf32> to vector<8x64xbf16>
    %c0_1 = arith.constant 0 : index
    %c0_2 = arith.constant 0 : index
    %2 = vector.load %arg2[%c0_1, %c0_2] : memref<64x1024xbf16, #tpu.memory_space<vmem>>, vector<64x1024xbf16>
    %cst = arith.constant dense<0.000000e+00> : vector<8x1024xf32>
    %3 = tpu.matmul %1, %2, %cst {dimension_numbers = #tpu.dot_dimension_numbers<[1], [0], [0], [1], [0, 0, 1, 1], [], []>} : vector<8x64xbf16>, vector<64x1024xbf16>, vector<8x1024xf32> -> vector<8x1024xf32>
    %c0_3 = arith.constant 0 : index
    %c0_4 = arith.constant 0 : index
    %4 = vector.load %arg3[%c0_3, %c0_4] : memref<1x1024xf32, #tpu.memory_space<vmem>>, vector<1x1024xf32>
    %5 = vector.broadcast %4 : vector<1x1024xf32> to vector<8x1024xf32>
    %6 = arith.addf %3, %5 : vector<8x1024xf32>
    %7 = math.tanh %6 : vector<8x1024xf32>
    %8 = arith.truncf %7 : vector<8x1024xf32> to vector<8x1024xbf16>
    %c0_5 = arith.constant 0 : index
    %c0_6 = arith.constant 0 : index
    %9 = vector.load %arg4[%c0_5, %c0_6] : memref<1024x512xbf16, #tpu.memory_space<vmem>>, vector<1024x512xbf16>
    %cst_7 = arith.constant dense<0.000000e+00> : vector<8x512xf32>
    %10 = tpu.matmul %8, %9, %cst_7 {dimension_numbers = #tpu.dot_dimension_numbers<[1], [0], [0], [1], [0, 0, 1, 1], [], []>} : vector<8x1024xbf16>, vector<1024x512xbf16>, vector<8x512xf32> -> vector<8x512xf32>
    %c0_8 = arith.constant 0 : index
    %c0_9 = arith.constant 0 : index
    %11 = vector.load %arg5[%c0_8, %c0_9] : memref<1x512xf32, #tpu.memory_space<vmem>>, vector<1x512xf32>
    %12 = vector.broadcast %11 : vector<1x512xf32> to vector<8x512xf32>
    %13 = arith.addf %10, %12 : vector<8x512xf32>
    %14 = math.tanh %13 : vector<8x512xf32>
    %15 = arith.truncf %14 : vector<8x512xf32> to vector<8x512xbf16>
    %c0_10 = arith.constant 0 : index
    %c0_11 = arith.constant 0 : index
    %16 = vector.load %arg6[%c0_10, %c0_11] : memref<512x256xbf16, #tpu.memory_space<vmem>>, vector<512x256xbf16>
    %cst_12 = arith.constant dense<0.000000e+00> : vector<8x256xf32>
    %17 = tpu.matmul %15, %16, %cst_12 {dimension_numbers = #tpu.dot_dimension_numbers<[1], [0], [0], [1], [0, 0, 1, 1], [], []>} : vector<8x512xbf16>, vector<512x256xbf16>, vector<8x256xf32> -> vector<8x256xf32>
    %c0_13 = arith.constant 0 : index
    %c0_14 = arith.constant 0 : index
    %18 = vector.load %arg7[%c0_13, %c0_14] : memref<1x256xf32, #tpu.memory_space<vmem>>, vector<1x256xf32>
    %19 = vector.broadcast %18 : vector<1x256xf32> to vector<8x256xf32>
    %20 = arith.addf %17, %19 : vector<8x256xf32>
    %21 = math.tanh %20 : vector<8x256xf32>
    %22 = arith.truncf %21 : vector<8x256xf32> to vector<8x256xbf16>
    %c0_15 = arith.constant 0 : index
    %c0_16 = arith.constant 0 : index
    %23 = vector.load %arg8[%c0_15, %c0_16] : memref<256x128xbf16, #tpu.memory_space<vmem>>, vector<256x128xbf16>
    %cst_17 = arith.constant dense<0.000000e+00> : vector<8x128xf32>
    %24 = tpu.matmul %22, %23, %cst_17 {dimension_numbers = #tpu.dot_dimension_numbers<[1], [0], [0], [1], [0, 0, 1, 1], [], []>} : vector<8x256xbf16>, vector<256x128xbf16>, vector<8x128xf32> -> vector<8x128xf32>
    %c0_18 = arith.constant 0 : index
    %c0_19 = arith.constant 0 : index
    %25 = vector.load %arg9[%c0_18, %c0_19] : memref<1x128xf32, #tpu.memory_space<vmem>>, vector<1x128xf32>
    %26 = vector.broadcast %25 : vector<1x128xf32> to vector<8x128xf32>
    %27 = arith.addf %24, %26 : vector<8x128xf32>
    %c0_20 = arith.constant 0 : index
    %c0_21 = arith.constant 0 : index
    %28 = vector.load %arg10[%c0_20, %c0_21] : memref<8x128xf32, #tpu.memory_space<vmem>>, vector<8x128xf32>
    tpu.vector_store %arg10[%c0_20, %c0_21], %27 {strides = array<i32>} : memref<8x128xf32, #tpu.memory_space<vmem>>, vector<8x128xf32>,
    return
  }
  func.func @transform_0(%arg0: i32) -> (i32, i32) {
    %c0_i32 = arith.constant 0 : i32
    %c0_i32_0 = arith.constant 0 : i32
    return %arg0, %c0_i32 : i32, i32
  }
  func.func @transform_1(%arg0: i32) -> (i32, i32) {
    %c0_i32 = arith.constant 0 : i32
    %c0_i32_0 = arith.constant 0 : i32
    %c0_i32_1 = arith.constant 0 : i32
    return %c0_i32, %c0_i32_0 : i32, i32
  }
  func.func @transform_2(%arg0: i32) -> (i32, i32) {
    %c0_i32 = arith.constant 0 : i32
    %c0_i32_0 = arith.constant 0 : i32
    %c0_i32_1 = arith.constant 0 : i32
    return %c0_i32, %c0_i32_0 : i32, i32
  }
  func.func @transform_3(%arg0: i32) -> (i32, i32) {
    %c0_i32 = arith.constant 0 : i32
    %c0_i32_0 = arith.constant 0 : i32
    %c0_i32_1 = arith.constant 0 : i32
    return %c0_i32, %c0_i32_0 : i32, i32
  }
  func.func @transform_4(%arg0: i32) -> (i32, i32) {
    %c0_i32 = arith.constant 0 : i32
    %c0_i32_0 = arith.constant 0 : i32
    %c0_i32_1 = arith.constant 0 : i32
    return %c0_i32, %c0_i32_0 : i32, i32
  }
  func.func @transform_5(%arg0: i32) -> (i32, i32) {
    %c0_i32 = arith.constant 0 : i32
    %c0_i32_0 = arith.constant 0 : i32
    %c0_i32_1 = arith.constant 0 : i32
    return %c0_i32, %c0_i32_0 : i32, i32
  }
  func.func @transform_6(%arg0: i32) -> (i32, i32) {
    %c0_i32 = arith.constant 0 : i32
    %c0_i32_0 = arith.constant 0 : i32
    %c0_i32_1 = arith.constant 0 : i32
    return %c0_i32, %c0_i32_0 : i32, i32
  }
  func.func @transform_7(%arg0: i32) -> (i32, i32) {
    %c0_i32 = arith.constant 0 : i32
    %c0_i32_0 = arith.constant 0 : i32
    %c0_i32_1 = arith.constant 0 : i32
    return %c0_i32, %c0_i32_0 : i32, i32
  }
  func.func @transform_8(%arg0: i32) -> (i32, i32) {
    %c0_i32 = arith.constant 0 : i32
    %c0_i32_0 = arith.constant 0 : i32
    %c0_i32_1 = arith.constant 0 : i32
    return %c0_i32, %c0_i32_0 : i32, i32
  }
  func.func @transform_9(%arg0: i32) -> (i32, i32) {
    %c0_i32 = arith.constant 0 : i32
    %c0_i32_0 = arith.constant 0 : i32
    return %arg0, %c0_i32 : i32, i32
  }
}

</mosaic_0001>

<bundles_post_ra>
// kernel: tpu_custom_call.1
= control target key start
LH: loop header
LB: loop body
LE: loop exit
PB: predicated region body
PF: predicated region fallthrough
CT: control target
= control target key end

     0   :  { %s6250_s0 = inlined_call_operand.hbm [shape: f32[16,64], index: 0, kind: input, shape index: {}]   ;;  %s6251_s1 = inlined_call_operand.hbm [shape: bf16[64,1024], index: 1, kind: input, shape index: {}]   ;;  %s6252_s2 = inlined_call_operand.hbm [shape: f32[1,1024], index: 2, kind: input, shape index: {}]   ;;  %s6253_s3 = inlined_call_operand.hbm [shape: bf16[1024,512], index: 3, kind: input, shape index: {}]   ;;  %s6254_s4 = inlined_call_operand.hbm [shape: f32[1,512], index: 4, kind: input, shape index: {}]   ;;  %s6255_s5 = inlined_call_operand.hbm [shape: bf16[512,256], index: 5, kind: input, shape index: {}]   ;;  %s6256_s6 = inlined_call_operand.vmem [shape: f32[1,256], index: 6, kind: input, shape index: {}]   ;;  %s6257_s7 = inlined_call_operand.hbm [shape: bf16[256,128], index: 7, kind: input, shape index: {}]   ;;  %s6258_s8 = inlined_call_operand.vmem [shape: f32[1,128], index: 8, kind: input, shape index: {}]   ;;  %s6259_s9 = inlined_call_operand.hbm [shape: f32[16,128], index: 9, kind: output, shape index: {}]  }
   0x1   :  { %6260 = sst [smem:[#allocation20_spill]] %s6251_s1 }
   0x2   :  { %6261 = sst [smem:[#allocation21_spill]] %s6252_s2 }
   0x3   :  { %6262 = sst [smem:[#allocation22_spill]] %s6253_s3 }
   0x4   :  { %6263 = sst [smem:[#allocation23_spill]] %s6254_s4 }
   0x5   :  { %14 = vsyncpa [#allocation3], 0 }
   0x6   :  { %16 = vsyncpa [#allocation3 + $0x1], 0 }
   0x7   :  { %17 = vsyncpa [#allocation6], 0 }
   0x8   :  { %18 = vsyncpa [#allocation9], 0 }
   0x9   :  { %19 = vsyncpa [#allocation12], 0 }
   0xa   :  { %20 = vsyncpa [#allocation4], 0 }
   0xb   :  { %22 = vsyncpa [#allocation4 + $0x1], 0  ;;  %s5922_s30 = smov 0   ;;  %s5924_s10 = smov 0  }
   0xc   :  { %s5926_s11 = smov 0   ;;  %s5928_s12 = smov 0  }
   0xd LB: > { %s6264_s1 = sld [smem:[#allocation20_spill]]  ;;  %s5946_s16 = sadd.s32 4294967295, %s5856_s12   ;;  %s5856_s12 = sphi %s5928_s12, %s6279_s12   ;;  %s5852_s11 = sphi %s5926_s11, %s6278_s11   ;;  %s5848_s10 = sphi %s5924_s10, %s6277_s10   ;;  %s5844_s30 = sphi %s5922_s30, %s6276_s30  }
   0xe   : > { %p3553_p0 = scmp.ge.s32.totalorder %s5856_s12, 1  ;;  %p49_p1 = scmp.eq.s32.totalorder %s5946_s16, 0 }
   0xf   : > { %p253_p2 = scmp.lt.s32.totalorder %s5856_s12, 3  ;;  %s5858_s18 = smov [#allocation5]  }
  0x10   : > { %s266_s19 = sshll.u32 %s5858_s18, 4  ;;  %s6266_s3 = sld [smem:[#allocation22_spill]]  ;;  %s267_s19 = int_to_ptr.vmem [resolvable:$true] %s266_s19 }
  0x11   : > { %p5951_p3 = pnand %p3553_p0, %p253_p2  ;;  %s5859_s24 = smov [#allocation8]  }
  0x12   : > { %s292_s25 = sshll.u32 %s5859_s24, 4  ;;  %s5860_s26 = smov 512   ;;  %s293_s25 = int_to_ptr.vmem [resolvable:$true] %s292_s25 }
  0x13   : > { %s264_s15 = sshll.u32 %s6264_s1, 4  ;;  %p5452_p4 = pneg %p5951_p3  ;;  %s265_s15 = int_to_ptr.hbm [resolvable:$true] %s264_s15 }
  0x14   : > { %s5861_s27 = smov 32   ;;  %s5862_s28 = smov 256  }
  0x15   : > { %p5963_p6 = pnand %p5452_p4, %p49_p1  ;;  %s5863_s29 = smov 16  }
  0x16   : > { %s290_s22 = sshll.u32 %s6266_s3, 4  ;;  %s316_s18 = sshll.u32 %s6255_s5, 4  ;;  %s291_s22 = int_to_ptr.hbm [resolvable:$true] %s290_s22  ;;  %s317_s18 = int_to_ptr.hbm [resolvable:$true] %s316_s18 }
  0x17   : > { %5455 = dma.hbm_to_vmem [thread:$0]  (!%p5963_p6), %s265_s15, 4096, %s267_s19, [#allocation6], %s5860_s26, %s5860_s26, %s5861_s27  }
  0x18   : > { %5461 = dma.hbm_to_vmem [thread:$0]  (!%p5963_p6), %s291_s22, 32768, %s293_s25, [#allocation9], %s5862_s28, %s5862_s28, %s5863_s29  }
  0x19   : > { %s5864_s20 = smov [#allocation11]   ;;  %s6268_s2 = sld [smem:[#allocation21_spill]] }
  0x1a   : > { %s318_s21 = sshll.u32 %s5864_s20, 4  ;;  %s5865_s15 = smov 128   ;;  %s319_s21 = int_to_ptr.vmem [resolvable:$true] %s318_s21 }
  0x1b   : > { %s5866_s19 = smov 8   ;;  %s5867_s22 = smov [#allocation7]  }
  0x1c   : > { %5467 = dma.hbm_to_vmem [thread:$0]  (!%p5963_p6), %s317_s18, 8192, %s319_s21, [#allocation12], %s5865_s15, %s5865_s15, %s5866_s19  }
  0x1d   : > { %s281_s25 = sshll.u32 %s5867_s22, 4  ;;  %s6269_s4 = sld [smem:[#allocation23_spill]]  ;;  %s282_s25 = int_to_ptr.vmem [resolvable:$true] %s281_s25 }
  0x1e   : > { %s333_s13 = sshll.u32 %s6257_s7, 4  ;;  %s5868_s14 = smov [#allocation10]   ;;  %s334_s13 = int_to_ptr.hbm [resolvable:$true] %s333_s13 }
  0x1f   : > { %s279_s3 = sshll.u32 %s6268_s2, 4  ;;  %s307_s18 = sshll.u32 %s5868_s14, 4  ;;  %s280_s3 = int_to_ptr.hbm [resolvable:$true] %s279_s3  ;;  %s308_s18 = int_to_ptr.vmem [resolvable:$true] %s307_s18 }
  0x20   : > { %5458 = dma.hbm_to_vmem [thread:$0]  (!%p5963_p6), %s280_s3, 128, %s282_s25, [#allocation6]  }
  0x21   : > { %s5869_s20 = smov [#allocation13]   ;;  %s5870_s21 = smov 64  }
  0x22   : > { %s335_s3 = sshll.u32 %s5869_s20, 4  ;;  %s5871_s24 = smov 4   ;;  %s336_s3 = int_to_ptr.vmem [resolvable:$true] %s335_s3 }
  0x23   : > { %s305_s28 = sshll.u32 %s6269_s4, 4  ;;  %s3552_s15 = sadd.s32 4294967294, %s5856_s12   ;;  %s306_s28 = int_to_ptr.hbm [resolvable:$true] %s305_s28 }
  0x24   : > { %5464 = dma.hbm_to_vmem [thread:$0]  (!%p5963_p6), %s306_s28, 64, %s308_s18, [#allocation9]  }
  0x25   : > { %5470 = dma.hbm_to_vmem [thread:$0]  (!%p5963_p6), %s334_s13, 2048, %s336_s3, [#allocation12], %s5870_s21, %s5870_s21, %s5871_s24  }
  0x26   : > { %s5993_s19 = sadd.s32 1, %s5856_s12   ;;  %s35_s25 = sadd.s32 1, %s5852_s11 }
  0x27   : > { %s32_s22 = ssub.s32 %s5856_s12, %s5993_s19  ;;  %p42_p8 = scmp.ne.s32.totalorder %s5852_s11, %s5848_s10 }
  0x28   : > { %p33_p7 = scmp.eq.s32.totalorder %s32_s22, 0  ;;  %p43_p9 = scmp.eq.s32.totalorder %s5856_s12, 0 }
  0x29   : > { %p48_p10 = scmp.ne.s32.totalorder %s5848_s10, %s5844_s30  ;;  %p240_p13 = scmp.eq.s32.totalorder %s5946_s16, 1 }
  0x2a   : > { %s6004_s26 = scalar_select %p33_p7, %s5852_s11, %s35_s25  }
  0x2b   : > { %p6006_p11 = por %p43_p9, %p42_p8  ;;  %p6012_p12 = por %p49_p1, %p48_p10 }
  0x2c   : > { %p246_p0 = scmp.eq.s32.totalorder %s3552_s15, 1  ;;  %p5485_p2 = scmp.lt.s32.totalorder %s5856_s12, 2 }
  0x2d   : > { %s352_s28 = sand.u32 1, %s5852_s11   ;;  %p6019_p4 = por %p240_p13, %p42_p8 }
  0x2e   : > { %p6023_p6 = por %p246_p0, %p48_p10  ;;  %s3561_s13 = sshll.u32 %s352_s28, 3 }
  0x2f   : > { %s3562_s14 = sshll.u32 %s5856_s12, 3  ;;  %s356_s21 = scalar_lea.vmem [#allocation2], %s3561_s13 }
  0x30   : > { %s360_s3 = scalar_lea.hbm %s6250_s0, %s3562_s14  ;;  %s364_s24 = sshll.u32 %s356_s21, 4  ;;  %s365_s24 = int_to_ptr.vmem [resolvable:$true] %s364_s24 }
  0x31   : > { %s362_s22 = sshll.u32 %s360_s3, 4  ;;  %p6033_p7 = pnand %p5485_p2, %p6006_p11  ;;  %s363_s22 = int_to_ptr.hbm [resolvable:$true] %s362_s22 }
  0x32   : > { %s353_s25 = scalar_lea.sflag [#allocation3], %s352_s28  ;;  %s5748_s2 = sshra.s32 %s363_s22, 4  ;;  %s5749_s2 = int_to_ptr.hbm [resolvable:$true] %s5748_s2 }
  0x33   : > { %s5750_s4 = scalar_lea.hbm %s5749_s2, 8  ;;  %p5752_p9 = pneg %p6033_p7 }
  0x34   : > { %p5751_p8 = scmp.ne.s32.totalorder %s5749_s2, %s5750_s4  ;;  %s5755_s18 = scalar_lea.hbm %s6250_s0, 16 }
  0x35   : > { %p5756_p11 = scmp.lt.s32.totalorder %s5749_s2, %s6250_s0  ;;  %p5757_p0 = scmp.lt.s32.totalorder %s5755_s18, %s5750_s4 }
  0x36   : > { %p5753_p10 = pnand %p5752_p9, %p5751_p8 }
  0x37   : > { %p5758_p2 = por %p5757_p0, %p5756_p11 }
  0x38   : > { %p5754_p13 = pneg %p5753_p10 }
  0x3a   : > { %p5759_p5 = pnand %p5758_p2, %p5754_p13 }
  0x3c   : > { %5762 = shalt.err (!%p5759_p5)
}
  0x3d   : > { %5474 = dma.hbm_to_vmem [thread:$0]  (!%p6033_p7), %s363_s22, 128, %s365_s24, %s353_s25  }
  0x3e   : > { %373 = sbr.rel (%p5951_p3) target bundleno = 885 (0x375), region = 56  ;;  %s6050_s28 = sand.u32 (!%p5951_p3), 1, %s5848_s10  }
  0x3f   : > { %s3564_s3 = sshll.u32 (!%p5951_p3), %s6050_s28, 3  ;;  %s376_s21 = scalar_lea.sflag (!%p5951_p3), [#allocation3], %s6050_s28 }
  0x40   : > { %s6056_s2 = scalar_lea.vmem (!%p5951_p3), [#allocation2], %s3564_s3 }
  0x43   : > { %5823 = dma.done.wait (%p6012_p12), %s376_s21, 128  }
  0x44   : > { %5825 = vsyncadd (%p6012_p12), %s376_s21, 4294967168 }
  0x45   : > { %5827 = dma.done.wait (%p49_p1), [#allocation6], 4224  }
  0x46   : > { %5829 = vsyncadd (%p49_p1), [#allocation6], 4294963072 }
  0x47   : > { %5831 = dma.done.wait (%p49_p1), [#allocation9], 32832  }
  0x48   : > { %5833 = vsyncadd (%p49_p1), [#allocation9], 4294934464 }
  0x49   : > { %5835 = dma.done.wait (%p49_p1), [#allocation12], 10240  }
  0x4a   : > { %5837 = vsyncadd (%p49_p1), [#allocation12], 4294957056  ;;  %v3670_v0 = vld [vmem:[#allocation5 + $0xc0] sm:$0xf]  ;;  %v5080_v2 = vld [vmem:[#allocation5 + $0xc4] sm:$0xf] }
  0x4b   : > { %v5084_v1 = vld [vmem:[#allocation5 + $0xdc] sm:$0xf0]  ;;  %v3672_v4 = vld [vmem:[#allocation5 + $0xe0] sm:$0xf0]  ;;  %v3678_v22 = vld [vmem:[#allocation5 + $0xc8] sm:$0xf] }
  0x4c   : > { %v3671_v3 = vor.u32 %v5084_v1, %v3670_v0  ;;  %v3638_v5 = vld [vmem:[#allocation5 + $0x80] sm:$0xf]  ;;  %v3675_v7 = vor.u32 %v5080_v2, %v3672_v4  ;;  %v5072_v8 = vld [vmem:[#allocation5 + $0x84] sm:$0xf]  ;;  %v3686_v23 = vld [vmem:[#allocation5 + $0xd0] sm:$0xf] }
  0x4d   : > { %v5076_v6 = vld [vmem:[#allocation5 + $0x9c] sm:$0xf0]  ;;  %v3640_v9 = vld [vmem:[#allocation5 + $0xa0] sm:$0xf0]  ;;  %v5086_v24 = vld [vmem:[#allocation5 + $0xec] sm:$0xf0] }
  0x4e   : > { %666 = vmatpush.bf16.msra.mxu2 %v3671_v3  ;;  %v3639_v10 = vor.u32 %v5076_v6, %v3638_v5  ;;  %679 = vmatpush.bf16.msra.mxu3 %v3675_v7  ;;  %v3643_v11 = vor.u32 %v5072_v8, %v3640_v9  ;;  %v3606_v12 = vld [vmem:[#allocation5 + $0x40] sm:$0xf]  ;;  %v5064_v14 = vld [vmem:[#allocation5 + $0x44] sm:$0xf]  ;;  %v5085_v25 = vld [vmem:[#allocation5 + $0xe4] sm:$0xf0]  ;;  %v3687_v26 = vor.u32 %v5086_v24, %v3686_v23 }
  0x4f   : > { %v5068_v13 = vld [vmem:[#allocation5 + $0x5c] sm:$0xf0]  ;;  %v3608_v15 = vld [vmem:[#allocation5 + $0x60] sm:$0xf0]  ;;  %v5082_v27 = vld [vmem:[#allocation5 + $0xd4] sm:$0xf]  ;;  %v3679_v38 = vor.u32 %v5085_v25, %v3678_v22 }
  0x50   : > { %v3574_v16 = vld [vmem:[#allocation5] sm:$0xf]  ;;  %v3607_v17 = vor.u32 %v5068_v13, %v3606_v12  ;;  %v5056_v19 = vld [vmem:[#allocation5 + $0x4] sm:$0xf]  ;;  %v3611_v21 = vor.u32 %v5064_v14, %v3608_v15  ;;  %v3688_v28 = vld [vmem:[#allocation5 + $0xf0] sm:$0xf0]  ;;  %718 = vmatpush.bf16.msra.mxu0 %v3687_v26 }
  0x51   : > { %v5060_v18 = vld [vmem:[#allocation5 + $0x1c] sm:$0xf0]  ;;  %v3576_v20 = vld [vmem:[#allocation5 + $0x20] sm:$0xf0]  ;;  %v446_v29 = vld [vmem:[%s6056_s2] sm:$0xff]  ;;  %v3691_v32 = vor.u32 %v5082_v27, %v3688_v28  ;;  %vm658_vm0 = vcmask 523264  }
  0x52   : > { %667 = vmatpush.bf16.msra.mxu2 %v3639_v10  ;;  %680 = vmatpush.bf16.msra.mxu3 %v3643_v11  ;;  %v5081_v30 = vld [vmem:[#allocation5 + $0xcc] sm:$0xf]  ;;  %v3575_v33 = vor.u32 %v5060_v18, %v3574_v16  ;;  %v3654_v34 = vld [vmem:[#allocation5 + $0x90] sm:$0xf]  ;;  %v5074_v36 = vld [vmem:[#allocation5 + $0x94] sm:$0xf]  ;;  %v3579_v37 = vor.u32 %v5056_v19, %v3576_v20  ;;  %v6075_v48 = vpack.c.bf16 %v446_v29, %v446_v29 }
  0x53   : > { %v3680_v31 = vld [vmem:[#allocation5 + $0xe8] sm:$0xf0]  ;;  %v5078_v35 = vld [vmem:[#allocation5 + $0xac] sm:$0xf0]  ;;  %v3646_v39 = vld [vmem:[#allocation5 + $0x88] sm:$0xf]  ;;  %731 = vmatpush.bf16.msra.mxu1 %v3691_v32 }
  0x54   : > { %v5077_v40 = vld [vmem:[#allocation5 + $0xa4] sm:$0xf0]  ;;  %v3655_v41 = vor.u32 %v5078_v35, %v3654_v34  ;;  %v3656_v42 = vld [vmem:[#allocation5 + $0xb0] sm:$0xf0]  ;;  %v3683_v43 = vor.u32 %v5081_v30, %v3680_v31  ;;  %v5073_v44 = vld [vmem:[#allocation5 + $0x8c] sm:$0xf] }
  0x55   : > { %v3648_v45 = vld [vmem:[#allocation5 + $0xa8] sm:$0xf0]  ;;  %v3659_v46 = vor.u32 %v5074_v36, %v3656_v42  ;;  %v3622_v47 = vld [vmem:[#allocation5 + $0x50] sm:$0xf]  ;;  %v5066_v50 = vld [vmem:[#allocation5 + $0x54] sm:$0xf]  ;;  %v3647_v53 = vor.u32 %v5077_v40, %v3646_v39 }
  0x56   : > { %668 = vmatpush.bf16.msra.mxu2 %v3607_v17  ;;  %681 = vmatpush.bf16.msra.mxu3 %v3611_v21  ;;  %v5070_v49 = vld [vmem:[#allocation5 + $0x6c] sm:$0xf0]  ;;  %v3624_v51 = vld [vmem:[#allocation5 + $0x70] sm:$0xf0]  ;;  %v3651_v56 = vor.u32 %v5073_v44, %v3648_v45  ;;  %v3614_v57 = vld [vmem:[#allocation5 + $0x48] sm:$0xf] }
  0x57   : > { %719 = vmatpush.bf16.msra.mxu0 %v3655_v41  ;;  %v3623_v52 = vor.u32 %v5070_v49, %v3622_v47  ;;  %v3590_v54 = vld [vmem:[#allocation5 + $0x10] sm:$0xf]  ;;  %v5069_v58 = vld [vmem:[#allocation5 + $0x64] sm:$0xf0]  ;;  %v5065_v59 = vld [vmem:[#allocation5 + $0x4c] sm:$0xf]  ;;  %732 = vmatpush.bf16.msra.mxu1 %v3659_v46  ;;  %v3627_v60 = vor.u32 %v5066_v50, %v3624_v51 }
  0x58   : > { %v5062_v55 = vld [vmem:[#allocation5 + $0x2c] sm:$0xf0]  ;;  %v3616_v61 = vld [vmem:[#allocation5 + $0x68] sm:$0xf0]  ;;  %v5058_v62 = vld [vmem:[#allocation5 + $0x14] sm:$0xf]  ;;  %v3615_v2 = vor.u32 %v5069_v58, %v3614_v57 }
  0x59   : > { %v3592_v63 = vld [vmem:[#allocation5 + $0x30] sm:$0xf0]  ;;  %v3582_v0 = vld [vmem:[#allocation5 + $0x8] sm:$0xf]  ;;  %v3591_v1 = vor.u32 %v5062_v55, %v3590_v54  ;;  %v5057_v4 = vld [vmem:[#allocation5 + $0xc] sm:$0xf]  ;;  %v3619_v6 = vor.u32 %v5065_v59, %v3616_v61 }
  0x5a   : > { %669 = vmatpush.bf16.msra.mxu2 %v3575_v33  ;;  %682 = vmatpush.bf16.msra.mxu3 %v3579_v37  ;;  %v5061_v3 = vld [vmem:[#allocation5 + $0x24] sm:$0xf0]  ;;  %v3584_v5 = vld [vmem:[#allocation5 + $0x28] sm:$0xf0]  ;;  %v3694_v7 = vld [vmem:[#allocation5 + $0xd8] sm:$0xf]  ;;  %v3595_v9 = vor.u32 %v5058_v62, %v3592_v63 }
  0x5b   : > { %720 = vmatpush.bf16.msra.mxu0 %v3623_v52  ;;  %733 = vmatpush.bf16.msra.mxu1 %v3627_v60  ;;  %v5087_v8 = vld [vmem:[#allocation5 + $0xf4] sm:$0xf0]  ;;  %v3822_v10 = vld [vmem:[#allocation8 + $0xe0] sm:$0xf]  ;;  %v5083_v14 = vld [vmem:[#allocation5 + $0xdc] sm:$0xf]  ;;  %v3583_v19 = vor.u32 %v5061_v3, %v3582_v0  ;;  %v3587_v23 = vor.u32 %v5057_v4, %v3584_v5 }
  0x5c   : > { %v5118_v11 = vld [vmem:[#allocation8 + $0xec] sm:$0xf0]  ;;  %v3950_v12 = vld [vmem:[#allocation8 + $0x1e0] sm:$0xf]  ;;  %v3696_v15 = vld [vmem:[#allocation5 + $0xf8] sm:$0xf0]  ;;  %v3695_v24 = vor.u32 %v5087_v8, %v3694_v7 }
  0x5d   : > { %3700 = vmatmul.msk.bf16.vlgmr.msra.gmra.mxu2 %vm658_vm0, %v6075_v48  ;;  %3701 = vmatmul.msk.bf16.vlgmr.msra.gmra.mxu3 %vm658_vm0, %v6075_v48  ;;  %v5150_v13 = vld [vmem:[#allocation8 + $0x1ec] sm:$0xf0]  ;;  %v3823_v16 = vor.u32 %v5118_v11, %v3822_v10  ;;  %v3934_v18 = vld [vmem:[#allocation8 + $0x1c0] sm:$0xf]  ;;  %v3699_v25 = vor.u32 %v5083_v14, %v3696_v15  ;;  %v5075_v29 = vld [vmem:[#allocation5 + $0x9c] sm:$0xf] }
  0x5e   : > { %692 = vmatpush.bf16.msrb.mxu2 %v3679_v38  ;;  %705 = vmatpush.bf16.msrb.mxu3 %v3683_v43  ;;  %v3951_v17 = vor.u32 %v5150_v13, %v3950_v12  ;;  %v3806_v20 = vld [vmem:[#allocation8 + $0xc0] sm:$0xf]  ;;  %v5114_v21 = vld [vmem:[#allocation8 + $0xcc] sm:$0xf0]  ;;  %v3664_v30 = vld [vmem:[#allocation5 + $0xb8] sm:$0xf0] }
  0x5f   : > { %721 = vmatpush.bf16.msra.mxu0 %v3591_v1  ;;  %v5146_v22 = vld [vmem:[#allocation8 + $0x1cc] sm:$0xf0]  ;;  %734 = vmatpush.bf16.msra.mxu1 %v3595_v9  ;;  %v3807_v31 = vor.u32 %v5114_v21, %v3806_v20  ;;  %v3790_v32 = vld [vmem:[#allocation8 + $0xa0] sm:$0xf]  ;;  %v3667_v37 = vor.u32 %v5075_v29, %v3664_v30  ;;  %v5067_v40 = vld [vmem:[#allocation5 + $0x5c] sm:$0xf] }
  0x60   : > { %v3662_v26 = vld [vmem:[#allocation5 + $0x98] sm:$0xf]  ;;  %v3935_v28 = vor.u32 %v5146_v22, %v3934_v18  ;;  %v3918_v35 = vld [vmem:[#allocation8 + $0x1a0] sm:$0xf]  ;;  %v3632_v41 = vld [vmem:[#allocation5 + $0x78] sm:$0xf0] }
  0x61   : > { %v5079_v27 = vld [vmem:[#allocation5 + $0xb4] sm:$0xf0]  ;;  %v3774_v44 = vld [vmem:[#allocation8 + $0x80] sm:$0xf]  ;;  %v3635_v51 = vor.u32 %v5067_v40, %v3632_v41  ;;  %v3600_v54 = vld [vmem:[#allocation5 + $0x38] sm:$0xf0] }
  0x62   : > { %693 = vmatpush.bf16.msrb.mxu2 %v3647_v53  ;;  %706 = vmatpush.bf16.msrb.mxu3 %v3651_v56  ;;  %v5110_v33 = vld [vmem:[#allocation8 + $0xac] sm:$0xf0]  ;;  %v3663_v34 = vor.u32 %v5079_v27, %v3662_v26  ;;  %v3902_v49 = vld [vmem:[#allocation8 + $0x180] sm:$0xf]  ;;  %v5059_v53 = vld [vmem:[#allocation5 + $0x1c] sm:$0xf] }
  0x63   : > { %3704 = vmatmul.msk.bf16.vlgmr.msra.gmra.mxu0 %vm658_vm0, %v6075_v48  ;;  %2341 = vmatpush.bf16.msrb.mxu1 %v3951_v17  ;;  %v5142_v36 = vld [vmem:[#allocation8 + $0x1ac] sm:$0xf0]  ;;  %v3791_v42 = vor.u32 %v5110_v33, %v3790_v32  ;;  %v3758_v56 = vld [vmem:[#allocation8 + $0x60] sm:$0xf]  ;;  %s5053_s23 = sshll.u32 %s5946_s16, 3  ;;  %s444_s14 = scalar_lea.vmem [#allocation14], %s3564_s3 }
  0x64   : > { %2328 = vmatpush.bf16.msrb.mxu0 %v3823_v16  ;;  %3705 = vmatmul.msk.bf16.vlgmr.msra.gmra.mxu1 %vm658_vm0, %v6075_v48  ;;  %v3630_v38 = vld [vmem:[#allocation5 + $0x58] sm:$0xf]  ;;  %v3919_v43 = vor.u32 %v5142_v36, %v3918_v35  ;;  %v4078_v57 = vld [vmem:[#allocation8 + $0x2e0] sm:$0xf]  ;;  %s3420_s13 = scalar_lea.hbm %s6259_s9, %s5053_s23  ;;  %s3422_s18 = sshll.u32 %s444_s14, 4  ;;  %s3423_s18 = int_to_ptr.vmem [resolvable:$true] %s3422_s18 }
  0x65   : > { %v5071_v39 = vld [vmem:[#allocation5 + $0x74] sm:$0xf0]  ;;  %v4206_v61 = vld [vmem:[#allocation8 + $0x3e0] sm:$0xf]  ;;  %s3424_s20 = sshll.u32 %s3420_s13, 4  ;;  %s3410_s16 = scalar_lea.sflag [#allocation4], %s6050_s28  ;;  %s3425_s20 = int_to_ptr.hbm [resolvable:$true] %s3424_s20 }
  0x66   : > { %694 = vmatpush.bf16.msrb.mxu2 %v3615_v2  ;;  %707 = vmatpush.bf16.msrb.mxu3 %v3619_v6  ;;  %v5106_v45 = vld [vmem:[#allocation8 + $0x8c] sm:$0xf0]  ;;  %v3631_v46 = vor.u32 %v5071_v39, %v3630_v38  ;;  %v3886_v0 = vld [vmem:[#allocation8 + $0x160] sm:$0xf]  ;;  %v3603_v2 = vor.u32 %v5059_v53, %v3600_v54  ;;  %s5792_s27 = sshra.s32 %s3425_s20, 4  ;;  %s5798_s3 = scalar_lea.hbm %s6259_s9, 16  ;;  %s5793_s27 = int_to_ptr.hbm [resolvable:$true] %s5792_s27 }
  0x67   : > { %2342 = vmatpush.bf16.msrb.mxu1 %v3935_v28  ;;  %v3598_v47 = vld [vmem:[#allocation5 + $0x18] sm:$0xf]  ;;  %v3775_v55 = vor.u32 %v5106_v45, %v3774_v44  ;;  %v3742_v6 = vld [vmem:[#allocation8 + $0x40] sm:$0xf]  ;;  %s5794_s21 = scalar_lea.hbm %s5793_s27, 8  ;;  %p5799_p12 = scmp.lt.s32.totalorder %s5793_s27, %s6259_s9 }
  0x68   : > { %2329 = vmatpush.bf16.msrb.mxu0 %v3807_v31  ;;  %v5138_v50 = vld [vmem:[#allocation8 + $0x18c] sm:$0xf0]  ;;  %v4062_v7 = vld [vmem:[#allocation8 + $0x2c0] sm:$0xf]  ;;  %p5795_p1 = scmp.ne.s32.totalorder %s5793_s27, %s5794_s21  ;;  %p5800_p7 = scmp.lt.s32.totalorder %s5798_s3, %s5794_s21 }
  0x69   : > { %v5063_v52 = vld [vmem:[#allocation5 + $0x34] sm:$0xf0]  ;;  %v3903_v59 = vor.u32 %v5138_v50, %v3902_v49  ;;  %v4190_v11 = vld [vmem:[#allocation8 + $0x3c0] sm:$0xf] }
  0x6a   : > { %695 = vmatpush.bf16.msrb.mxu2 %v3583_v19  ;;  %708 = vmatpush.bf16.msrb.mxu3 %v3587_v23  ;;  %v5182_v58 = vld [vmem:[#allocation8 + $0x2ec] sm:$0xf0]  ;;  %v3599_v63 = vor.u32 %v5063_v52, %v3598_v47  ;;  %v3870_v13 = vld [vmem:[#allocation8 + $0x140] sm:$0xf]  ;;  %p5796_p3 = pnand %p5795_p1, %p6019_p4  ;;  %p5801_p8 = por %p5800_p7, %p5799_p12 }
  0x6b   : > { %2343 = vmatpush.bf16.msrb.mxu1 %v3919_v43  ;;  %v5102_v60 = vld [vmem:[#allocation8 + $0x6c] sm:$0xf0]  ;;  %v4079_v3 = vor.u32 %v5182_v58, %v4078_v57  ;;  %v3726_v19 = vld [vmem:[#allocation8 + $0x20] sm:$0xf] }
  0x6c   : > { %2330 = vmatpush.bf16.msrb.mxu0 %v3791_v42  ;;  %v5214_v62 = vld [vmem:[#allocation8 + $0x3ec] sm:$0xf0]  ;;  %v3759_v4 = vor.u32 %v5102_v60, %v3758_v56  ;;  %v3854_v21 = vld [vmem:[#allocation8 + $0x120] sm:$0xf]  ;;  %p5797_p5 = pneg %p5796_p3 }
  0x6d   : > { %3702 = vmatmul.msk.bf16.vlgmr.msrb.gmra.mxu2 %vm658_vm0, %v6075_v48  ;;  %3703 = vmatmul.msk.bf16.vlgmr.msrb.gmra.mxu3 %vm658_vm0, %v6075_v48  ;;  %v5134_v1 = vld [vmem:[#allocation8 + $0x16c] sm:$0xf0]  ;;  %v4207_v5 = vor.u32 %v5214_v62, %v4206_v61  ;;  %v4046_v23 = vld [vmem:[#allocation8 + $0x2a0] sm:$0xf] }
  0x6e   : > { %744 = vmatpush.bf16.msra.mxu2 %v3695_v24  ;;  %757 = vmatpush.bf16.msra.mxu3 %v3699_v25  ;;  %v5178_v8 = vld [vmem:[#allocation8 + $0x2cc] sm:$0xf0]  ;;  %v3887_v9 = vor.u32 %v5134_v1, %v3886_v0  ;;  %v4174_v25 = vld [vmem:[#allocation8 + $0x3a0] sm:$0xf]  ;;  %p5802_p9 = pnand %p5801_p8, %p5797_p5 }
  0x6f   : > { %2344 = vmatpush.bf16.msrb.mxu1 %v3903_v59  ;;  %v5098_v10 = vld [vmem:[#allocation8 + $0x4c] sm:$0xf0]  ;;  %v4063_v15 = vor.u32 %v5178_v8, %v4062_v7  ;;  %v3710_v28 = vld [vmem:[#allocation8] sm:$0xf] }
  0x70   : > { %2331 = vmatpush.bf16.msrb.mxu0 %v3775_v55  ;;  %v5210_v12 = vld [vmem:[#allocation8 + $0x3cc] sm:$0xf0]  ;;  %v3743_v16 = vor.u32 %v5098_v10, %v3742_v6  ;;  %v3838_v32 = vld [vmem:[#allocation8 + $0x100] sm:$0xf] }
  0x71   : > { %v5130_v14 = vld [vmem:[#allocation8 + $0x14c] sm:$0xf0]  ;;  %v4191_v17 = vor.u32 %v5210_v12, %v4190_v11  ;;  %v4030_v35 = vld [vmem:[#allocation8 + $0x280] sm:$0xf] }
  0x72   : > { %745 = vmatpush.bf16.msra.mxu2 %v3663_v34  ;;  %758 = vmatpush.bf16.msra.mxu3 %v3667_v37  ;;  %v3871_v18 = vor.u32 %v5130_v14, %v3870_v13  ;;  %v5094_v20 = vld [vmem:[#allocation8 + $0x2c] sm:$0xf0]  ;;  %v4158_v37 = vld [vmem:[#allocation8 + $0x380] sm:$0xf] }
  0x73   : > { %2345 = vmatpush.bf16.msrb.mxu1 %v3887_v9  ;;  %v5126_v22 = vld [vmem:[#allocation8 + $0x12c] sm:$0xf0]  ;;  %v3727_v27 = vor.u32 %v5094_v20, %v3726_v19  ;;  %v4334_v39 = vld [vmem:[#allocation8 + $0x4e0] sm:$0xf] }
  0x74   : > { %2332 = vmatpush.bf16.msrb.mxu0 %v3759_v4  ;;  %v5174_v24 = vld [vmem:[#allocation8 + $0x2ac] sm:$0xf0]  ;;  %v3855_v29 = vor.u32 %v5126_v22, %v3854_v21  ;;  %v4462_v42 = vld [vmem:[#allocation8 + $0x5e0] sm:$0xf] }
  0x75   : > { %v5206_v26 = vld [vmem:[#allocation8 + $0x3ac] sm:$0xf0]  ;;  %v4047_v30 = vor.u32 %v5174_v24, %v4046_v23  ;;  %v4014_v49 = vld [vmem:[#allocation8 + $0x260] sm:$0xf] }
  0x76   : > { %746 = vmatpush.bf16.msra.mxu2 %v3631_v46  ;;  %759 = vmatpush.bf16.msra.mxu3 %v3635_v51  ;;  %v5090_v31 = vld [vmem:[#allocation8 + $0xc] sm:$0xf0]  ;;  %v4175_v34 = vor.u32 %v5206_v26, %v4174_v25  ;;  %v4142_v51 = vld [vmem:[#allocation8 + $0x360] sm:$0xf] }
  0x77   : > { %2346 = vmatpush.bf16.msrb.mxu1 %v3871_v18  ;;  %v5122_v33 = vld [vmem:[#allocation8 + $0x10c] sm:$0xf0]  ;;  %v3711_v41 = vor.u32 %v5090_v31, %v3710_v28  ;;  %v4318_v54 = vld [vmem:[#allocation8 + $0x4c0] sm:$0xf] }
  0x78   : > { %2333 = vmatpush.bf16.msrb.mxu0 %v3743_v16  ;;  %v5170_v36 = vld [vmem:[#allocation8 + $0x28c] sm:$0xf0]  ;;  %v3839_v44 = vor.u32 %v5122_v33, %v3838_v32  ;;  %v3998_v60 = vld [vmem:[#allocation8 + $0x240] sm:$0xf] }
  0x79   : > { %v5202_v38 = vld [vmem:[#allocation8 + $0x38c] sm:$0xf0]  ;;  %v4031_v45 = vor.u32 %v5170_v36, %v4030_v35  ;;  %v4126_v62 = vld [vmem:[#allocation8 + $0x340] sm:$0xf] }
  0x7a   : > { %747 = vmatpush.bf16.msra.mxu2 %v3599_v63  ;;  %760 = vmatpush.bf16.msra.mxu3 %v3603_v2  ;;  %v5246_v40 = vld [vmem:[#allocation8 + $0x4ec] sm:$0xf0]  ;;  %v4159_v46 = vor.u32 %v5202_v38, %v4158_v37  ;;  %v4302_v1 = vld [vmem:[#allocation8 + $0x4a0] sm:$0xf] }
  0x7b   : > { %v5278_v43 = vld [vmem:[#allocation8 + $0x5ec] sm:$0xf0]  ;;  %2347 = vmatpush.bf16.msrb.mxu1 %v3855_v29  ;;  %v4335_v47 = vor.u32 %v5246_v40, %v4334_v39  ;;  %v3982_v8 = vld [vmem:[#allocation8 + $0x220] sm:$0xf] }
  0x7c   : > { %2334 = vmatpush.bf16.msrb.mxu0 %v3727_v27  ;;  %v5166_v50 = vld [vmem:[#allocation8 + $0x26c] sm:$0xf0]  ;;  %v4463_v52 = vor.u32 %v5278_v43, %v4462_v42  ;;  %v4110_v10 = vld [vmem:[#allocation8 + $0x320] sm:$0xf] }
  0x7d   : > { %3706 = vmatmul.msk.bf16.vlgmr.msra.gmra.mxu2 %vm658_vm0, %v6075_v48  ;;  %3707 = vmatmul.msk.bf16.vlgmr.msra.gmra.mxu3 %vm658_vm0, %v6075_v48  ;;  %v5198_v53 = vld [vmem:[#allocation8 + $0x36c] sm:$0xf0]  ;;  %v4446_v48 = vld [vmem:[#allocation8 + $0x5c0] sm:$0xf]  ;;  %v4015_v57 = vor.u32 %v5166_v50, %v4014_v49 }
  0x7e   : > { %2354 = vmatpush.bf16.msrb.mxu2 %v4079_v3  ;;  %2367 = vmatpush.bf16.msrb.mxu3 %v4207_v5  ;;  %v5242_v55 = vld [vmem:[#allocation8 + $0x4cc] sm:$0xf0]  ;;  %v4143_v58 = vor.u32 %v5198_v53, %v4142_v51  ;;  %v4430_v3 = vld [vmem:[#allocation8 + $0x5a0] sm:$0xf] }
  0x7f   : > { %v5274_v56 = vld [vmem:[#allocation8 + $0x5cc] sm:$0xf0]  ;;  %2348 = vmatpush.bf16.msrb.mxu1 %v3839_v44  ;;  %v4319_v59 = vor.u32 %v5242_v55, %v4318_v54  ;;  %v4286_v13 = vld [vmem:[#allocation8 + $0x480] sm:$0xf] }
  0x80   : > { %2335 = vmatpush.bf16.msrb.mxu0 %v3711_v41  ;;  %v5162_v61 = vld [vmem:[#allocation8 + $0x24c] sm:$0xf0]  ;;  %v4447_v63 = vor.u32 %v5274_v56, %v4446_v48  ;;  %v3966_v18 = vld [vmem:[#allocation8 + $0x200] sm:$0xf] }
  0x81   : > { %v5194_v0 = vld [vmem:[#allocation8 + $0x34c] sm:$0xf0]  ;;  %v3999_v5 = vor.u32 %v5162_v61, %v3998_v60  ;;  %v4094_v22 = vld [vmem:[#allocation8 + $0x300] sm:$0xf] }
  0x82   : > { %2355 = vmatpush.bf16.msrb.mxu2 %v4063_v15  ;;  %2368 = vmatpush.bf16.msrb.mxu3 %v4191_v17  ;;  %v5238_v2 = vld [vmem:[#allocation8 + $0x4ac] sm:$0xf0]  ;;  %v4127_v6 = vor.u32 %v5194_v0, %v4126_v62  ;;  %v4414_v15 = vld [vmem:[#allocation8 + $0x580] sm:$0xf] }
  0x83   : > { %2393 = vmatpush.bf16.msra.mxu1 %v4463_v52  ;;  %v5270_v4 = vld [vmem:[#allocation8 + $0x5ac] sm:$0xf0]  ;;  %v4303_v7 = vor.u32 %v5238_v2, %v4302_v1  ;;  %v4270_v25 = vld [vmem:[#allocation8 + $0x460] sm:$0xf] }
  0x84   : > { %2380 = vmatpush.bf16.msra.mxu0 %v4335_v47  ;;  %v5158_v9 = vld [vmem:[#allocation8 + $0x22c] sm:$0xf0]  ;;  %v4431_v11 = vor.u32 %v5270_v4, %v4430_v3  ;;  %v4398_v27 = vld [vmem:[#allocation8 + $0x560] sm:$0xf] }
  0x85   : > { %v5190_v12 = vld [vmem:[#allocation8 + $0x32c] sm:$0xf0]  ;;  %v3983_v17 = vor.u32 %v5158_v9, %v3982_v8  ;;  %v4590_v29 = vld [vmem:[#allocation8 + $0x6e0] sm:$0xf] }
  0x86   : > { %2356 = vmatpush.bf16.msrb.mxu2 %v4047_v30  ;;  %2369 = vmatpush.bf16.msrb.mxu3 %v4175_v34  ;;  %v5234_v14 = vld [vmem:[#allocation8 + $0x48c] sm:$0xf0]  ;;  %v4111_v19 = vor.u32 %v5190_v12, %v4110_v10  ;;  %v4718_v32 = vld [vmem:[#allocation8 + $0x7e0] sm:$0xf] }
  0x87   : > { %2394 = vmatpush.bf16.msra.mxu1 %v4447_v63  ;;  %v5266_v16 = vld [vmem:[#allocation8 + $0x58c] sm:$0xf0]  ;;  %v4287_v20 = vor.u32 %v5234_v14, %v4286_v13  ;;  %v4254_v39 = vld [vmem:[#allocation8 + $0x440] sm:$0xf] }
  0x88   : > { %2381 = vmatpush.bf16.msra.mxu0 %v4319_v59  ;;  %v5154_v21 = vld [vmem:[#allocation8 + $0x20c] sm:$0xf0]  ;;  %v4415_v24 = vor.u32 %v5266_v16, %v4414_v15  ;;  %v4382_v41 = vld [vmem:[#allocation8 + $0x540] sm:$0xf] }
  0x89   : > { %v5186_v23 = vld [vmem:[#allocation8 + $0x30c] sm:$0xf0]  ;;  %v3967_v31 = vor.u32 %v5154_v21, %v3966_v18  ;;  %v4574_v44 = vld [vmem:[#allocation8 + $0x6c0] sm:$0xf] }
  0x8a   : > { %2357 = vmatpush.bf16.msrb.mxu2 %v4031_v45  ;;  %2370 = vmatpush.bf16.msrb.mxu3 %v4159_v46  ;;  %v5230_v26 = vld [vmem:[#allocation8 + $0x46c] sm:$0xf0]  ;;  %v4095_v34 = vor.u32 %v5186_v23, %v4094_v22  ;;  %v4702_v49 = vld [vmem:[#allocation8 + $0x7c0] sm:$0xf] }
  0x8b   : > { %2395 = vmatpush.bf16.msra.mxu1 %v4431_v11  ;;  %v5262_v28 = vld [vmem:[#allocation8 + $0x56c] sm:$0xf0]  ;;  %v4271_v35 = vor.u32 %v5230_v26, %v4270_v25  ;;  %v4238_v52 = vld [vmem:[#allocation8 + $0x420] sm:$0xf] }
  0x8c   : > { %2382 = vmatpush.bf16.msra.mxu0 %v4303_v7  ;;  %v5310_v30 = vld [vmem:[#allocation8 + $0x6ec] sm:$0xf0]  ;;  %v4399_v36 = vor.u32 %v5262_v28, %v4398_v27  ;;  %v4366_v54 = vld [vmem:[#allocation8 + $0x520] sm:$0xf] }
  0x8d   : > { %v5342_v33 = vld [vmem:[#allocation8 + $0x7ec] sm:$0xf0]  ;;  %v4591_v37 = vor.u32 %v5310_v30, %v4590_v29  ;;  %v4558_v56 = vld [vmem:[#allocation8 + $0x6a0] sm:$0xf]  ;;  %v6093_v29 = vld [vmem:[#allocation7] sm:$0xff] }
  0x8e   : > { %2358 = vmatpush.bf16.msrb.mxu2 %v4015_v57  ;;  %2371 = vmatpush.bf16.msrb.mxu3 %v4143_v58  ;;  %v4719_v38 = vor.u32 %v5342_v33, %v4718_v32  ;;  %v5226_v40 = vld [vmem:[#allocation8 + $0x44c] sm:$0xf0]  ;;  %v4686_v60 = vld [vmem:[#allocation8 + $0x7a0] sm:$0xf] }
  0x8f   : > { %2396 = vmatpush.bf16.msra.mxu1 %v4415_v24  ;;  %v4255_v42 = vor.u32 %v5226_v40, %v4254_v39  ;;  %v5258_v43 = vld [vmem:[#allocation8 + $0x54c] sm:$0xf0]  ;;  %v4222_v63 = vld [vmem:[#allocation8 + $0x400] sm:$0xf] }
  0x90   : > { %2383 = vmatpush.bf16.msra.mxu0 %v4287_v20  ;;  %v5306_v45 = vld [vmem:[#allocation8 + $0x6cc] sm:$0xf0]  ;;  %v4383_v46 = vor.u32 %v5258_v43, %v4382_v41  ;;  %v4350_v1 = vld [vmem:[#allocation8 + $0x500] sm:$0xf] }
  0x91   : > { %v4575_v47 = vor.u32 %v5306_v45, %v4574_v44  ;;  %v5338_v50 = vld [vmem:[#allocation8 + $0x7cc] sm:$0xf0]  ;;  %v4542_v4 = vld [vmem:[#allocation8 + $0x680] sm:$0xf]  ;;  %v5116_v44 = vld [vmem:[#allocation8 + $0xe4] sm:$0xf] }
  0x92   : > { %2359 = vmatpush.bf16.msrb.mxu2 %v3999_v5  ;;  %2372 = vmatpush.bf16.msrb.mxu3 %v4127_v6  ;;  %v4703_v51 = vor.u32 %v5338_v50, %v4702_v49  ;;  %v5222_v53 = vld [vmem:[#allocation8 + $0x42c] sm:$0xf0]  ;;  %v4670_v8 = vld [vmem:[#allocation8 + $0x780] sm:$0xf]  ;;  %v3824_v45 = vld [vmem:[#allocation8 + $0xf0] sm:$0xf0] }
  0x93   : > { %2397 = vmatpush.bf16.msra.mxu1 %v4399_v36  ;;  %v4239_v55 = vor.u32 %v5222_v53, %v4238_v52  ;;  %v5254_v48 = vld [vmem:[#allocation8 + $0x52c] sm:$0xf0]  ;;  %v4526_v11 = vld [vmem:[#allocation8 + $0x660] sm:$0xf]  ;;  %v482_v36 = vperm.slane %v6093_v29, 0  ;;  %v486_v49 = vperm.slane %v6093_v29, 4 }
  0x94   : > { %2384 = vmatpush.bf16.msra.mxu0 %v4271_v35  ;;  %v5302_v57 = vld [vmem:[#allocation8 + $0x6ac] sm:$0xf0]  ;;  %v4367_v58 = vor.u32 %v5254_v48, %v4366_v54  ;;  %v4654_v13 = vld [vmem:[#allocation8 + $0x760] sm:$0xf]  ;;  %v3827_v54 = vor.u32 %v5116_v44, %v3824_v45 }
  0x95   : > { %v4559_v59 = vor.u32 %v5302_v57, %v4558_v56  ;;  %v5334_v61 = vld [vmem:[#allocation8 + $0x7ac] sm:$0xf0]  ;;  %v4494_v23 = vld [vmem:[#allocation8 + $0x620] sm:$0xf]  ;;  %v5112_v57 = vld [vmem:[#allocation8 + $0xc4] sm:$0xf] }
  0x96   : > { %2360 = vmatpush.bf16.msrb.mxu2 %v3983_v17  ;;  %2373 = vmatpush.bf16.msrb.mxu3 %v4111_v19  ;;  %v4687_v62 = vor.u32 %v5334_v61, %v4686_v60  ;;  %v5218_v0 = vld [vmem:[#allocation8 + $0x40c] sm:$0xf0]  ;;  %v4510_v17 = vld [vmem:[#allocation8 + $0x640] sm:$0xf] }
  0x97   : > { %2398 = vmatpush.bf16.msra.mxu1 %v4383_v46  ;;  %v4223_v2 = vor.u32 %v5218_v0, %v4222_v63  ;;  %v5250_v3 = vld [vmem:[#allocation8 + $0x50c] sm:$0xf0]  ;;  %v4638_v19 = vld [vmem:[#allocation8 + $0x740] sm:$0xf]  ;;  %v5148_v46 = vld [vmem:[#allocation8 + $0x1e4] sm:$0xf] }
  0x98   : > { %2385 = vmatpush.bf16.msra.mxu0 %v4255_v42  ;;  %v5298_v5 = vld [vmem:[#allocation8 + $0x68c] sm:$0xf0]  ;;  %v4351_v6 = vor.u32 %v5250_v3, %v4350_v1  ;;  %v4622_v25 = vld [vmem:[#allocation8 + $0x720] sm:$0xf]  ;;  %v3936_v63 = vld [vmem:[#allocation8 + $0x1d0] sm:$0xf0] }
  0x99   : > { %v4543_v7 = vor.u32 %v5298_v5, %v4542_v4  ;;  %v5330_v9 = vld [vmem:[#allocation8 + $0x78c] sm:$0xf0]  ;;  %v4478_v30 = vld [vmem:[#allocation8 + $0x600] sm:$0xf]  ;;  %v485_v4 = vperm.slane %v6093_v29, 3 }
  0x9a   : > { %2361 = vmatpush.bf16.msrb.mxu2 %v3967_v31  ;;  %2374 = vmatpush.bf16.msrb.mxu3 %v4095_v34  ;;  %v4671_v10 = vor.u32 %v5330_v9, %v4670_v8  ;;  %v5294_v12 = vld [vmem:[#allocation8 + $0x66c] sm:$0xf0]  ;;  %v4606_v32 = vld [vmem:[#allocation8 + $0x700] sm:$0xf]  ;;  %v5140_v8 = vld [vmem:[#allocation8 + $0x1a4] sm:$0xf] }
  0x9b   : > { %2399 = vmatpush.bf16.msra.mxu1 %v4367_v58  ;;  %v4527_v14 = vor.u32 %v5294_v12, %v4526_v11  ;;  %v5326_v15 = vld [vmem:[#allocation8 + $0x76c] sm:$0xf0]  ;;  %v3808_v58 = vld [vmem:[#allocation8 + $0xd0] sm:$0xf0] }
  0x9c   : > { %2386 = vmatpush.bf16.msra.mxu0 %v4239_v55  ;;  %v4655_v16 = vor.u32 %v5326_v15, %v4654_v13  ;;  %v5290_v18 = vld [vmem:[#allocation8 + $0x64c] sm:$0xf0]  ;;  %v3811_v3 = vor.u32 %v5112_v57, %v3808_v58  ;;  %v3920_v9 = vld [vmem:[#allocation8 + $0x1b0] sm:$0xf0]  ;;  %v5092_v58 = vld [vmem:[#allocation8 + $0x24] sm:$0xf] }
  0x9d   : > { %v4511_v20 = vor.u32 %v5290_v18, %v4510_v17  ;;  %v5322_v21 = vld [vmem:[#allocation8 + $0x74c] sm:$0xf0]  ;;  %v3923_v15 = vor.u32 %v5140_v8, %v3920_v9  ;;  %v3776_v17 = vld [vmem:[#allocation8 + $0x90] sm:$0xf0]  ;;  %v5136_v18 = vld [vmem:[#allocation8 + $0x184] sm:$0xf] }
  0x9e   : > { %2406 = vmatpush.bf16.msra.mxu2 %v4591_v37  ;;  %2419 = vmatpush.bf16.msra.mxu3 %v4719_v38  ;;  %v4639_v22 = vor.u32 %v5322_v21, %v4638_v19  ;;  %v5286_v24 = vld [vmem:[#allocation8 + $0x62c] sm:$0xf0]  ;;  %v483_v37 = vperm.slane %v6093_v29, 1  ;;  %v3904_v19 = vld [vmem:[#allocation8 + $0x190] sm:$0xf0] }
  0x9f   : > { %2400 = vmatpush.bf16.msra.mxu1 %v4351_v6  ;;  %v4495_v26 = vor.u32 %v5286_v24, %v4494_v23  ;;  %v5318_v27 = vld [vmem:[#allocation8 + $0x72c] sm:$0xf0]  ;;  %v5108_v6 = vld [vmem:[#allocation8 + $0xa4] sm:$0xf]  ;;  %v3907_v23 = vor.u32 %v5136_v18, %v3904_v19  ;;  %v4160_v19 = vld [vmem:[#allocation8 + $0x390] sm:$0xf0] }
  0xa0   : > { %2387 = vmatpush.bf16.msra.mxu0 %v4223_v2  ;;  %v4623_v28 = vor.u32 %v5318_v27, %v4622_v25  ;;  %v5282_v31 = vld [vmem:[#allocation8 + $0x60c] sm:$0xf0]  ;;  %v484_v2 = vperm.slane %v6093_v29, 2  ;;  %v5100_v24 = vld [vmem:[#allocation8 + $0x64] sm:$0xf] }
  0xa1   : > { %v4479_v33 = vor.u32 %v5282_v31, %v4478_v30  ;;  %v5314_v34 = vld [vmem:[#allocation8 + $0x70c] sm:$0xf0]  ;;  %v3760_v25 = vld [vmem:[#allocation8 + $0x70] sm:$0xf0]  ;;  %v5200_v18 = vld [vmem:[#allocation8 + $0x384] sm:$0xf] }
  0xa2   : > { %2407 = vmatpush.bf16.msra.mxu2 %v4575_v47  ;;  %2420 = vmatpush.bf16.msra.mxu3 %v4703_v51  ;;  %v4607_v35 = vor.u32 %v5314_v34, %v4606_v32  ;;  %v3952_v47 = vld [vmem:[#allocation8 + $0x1f0] sm:$0xf0]  ;;  %v487_v51 = vperm.slane %v6093_v29, 5 }
  0xa3   : > { %v3955_v56 = vor.u32 %v5148_v46, %v3952_v47  ;;  %v3888_v27 = vld [vmem:[#allocation8 + $0x170] sm:$0xf0]  ;;  %v5128_v47 = vld [vmem:[#allocation8 + $0x144] sm:$0xf] }
  0xa4   : > { %v4080_v32 = vld [vmem:[#allocation8 + $0x2f0] sm:$0xf0] }
  0xa5   : > { %v4208_v34 = vld [vmem:[#allocation8 + $0x3f0] sm:$0xf0] }
  0xa6   : > { %2408 = vmatpush.bf16.msra.mxu2 %v4559_v59  ;;  %2421 = vmatpush.bf16.msra.mxu3 %v4687_v62  ;;  %v5144_v62 = vld [vmem:[#allocation8 + $0x1c4] sm:$0xf] }
  0xa7   : > { %v3939_v5 = vor.u32 %v5144_v62, %v3936_v63  ;;  %v5124_v63 = vld [vmem:[#allocation8 + $0x124] sm:$0xf] }
  0xaa   : > { %2409 = vmatpush.bf16.msra.mxu2 %v4543_v7  ;;  %2422 = vmatpush.bf16.msra.mxu3 %v4671_v10  ;;  %v3792_v7 = vld [vmem:[#allocation8 + $0xb0] sm:$0xf0] }
  0xab   : > { %v3795_v13 = vor.u32 %v5108_v6, %v3792_v7 }
  0xae   : > { %2410 = vmatpush.bf16.msra.mxu2 %v4527_v14  ;;  %2423 = vmatpush.bf16.msra.mxu3 %v4655_v16  ;;  %v5104_v16 = vld [vmem:[#allocation8 + $0x84] sm:$0xf] }
  0xaf   : > { %v3779_v21 = vor.u32 %v5104_v16, %v3776_v17  ;;  %v5168_v16 = vld [vmem:[#allocation8 + $0x284] sm:$0xf]  ;;  %v4032_v17 = vld [vmem:[#allocation8 + $0x290] sm:$0xf0] }
  0xb2   : > { %2411 = vmatpush.bf16.msra.mxu2 %v4511_v20  ;;  %2424 = vmatpush.bf16.msra.mxu3 %v4639_v22 }
  0xb6   : > { %2412 = vmatpush.bf16.msra.mxu2 %v4495_v26  ;;  %2425 = vmatpush.bf16.msra.mxu3 %v4623_v28  ;;  %v5132_v26 = vld [vmem:[#allocation8 + $0x164] sm:$0xf] }
  0xb7   : > { %v5180_v28 = vld [vmem:[#allocation8 + $0x2e4] sm:$0xf] }
  0xb8   : > { %v4083_v45 = vor.u32 %v5180_v28, %v4080_v32  ;;  %v5164_v28 = vld [vmem:[#allocation8 + $0x264] sm:$0xf] }
  0xba   : > { %2413 = vmatpush.bf16.msra.mxu2 %v4479_v33  ;;  %2426 = vmatpush.bf16.msra.mxu3 %v4607_v35  ;;  %v5212_v33 = vld [vmem:[#allocation8 + $0x3e4] sm:$0xf] }
  0xbb   : > { %v4211_v46 = vor.u32 %v5212_v33, %v4208_v34  ;;  %v5196_v34 = vld [vmem:[#allocation8 + $0x364] sm:$0xf] }
  0xe0   : > { %v671_v38 = vpop.f32.mrf.mxu2  ;;  %v684_v40 = vpop.f32.mrf.mxu3 }
  0xe1   : > { %v672_v39 = vadd.f32 %v671_v38, %v482_v36  ;;  %v685_v41 = vadd.f32 %v684_v40, %v483_v37  ;;  %v723_v42 = vpop.f32.mrf.mxu0  ;;  %v736_v43 = vpop.f32.mrf.mxu1  ;;  %v3763_v40 = vor.u32 %v5100_v24, %v3760_v25 }
  0xe2   : > { %v724_v61 = vadd.f32 %v723_v42, %v486_v49  ;;  %v737_v0 = vadd.f32 %v736_v43, %v487_v51  ;;  %v5096_v42 = vld [vmem:[#allocation8 + $0x44] sm:$0xf]  ;;  %v3744_v43 = vld [vmem:[#allocation8 + $0x50] sm:$0xf0] }
  0xe3   : > { %5540 = vtanh.f32 %v672_v39  ;;  %v3872_v49 = vld [vmem:[#allocation8 + $0x150] sm:$0xf0] }
  0xe4   : > { %5542 = vtanh.f32 %v685_v41  ;;  %v3891_v41 = vor.u32 %v5132_v26, %v3888_v27  ;;  %v4064_v51 = vld [vmem:[#allocation8 + $0x2d0] sm:$0xf0]  ;;  %v3875_v57 = vor.u32 %v5128_v47, %v3872_v49  ;;  %v4035_v26 = vor.u32 %v5168_v16, %v4032_v17 }
  0xe5   : > { %5544 = vtanh.f32 %v724_v61  ;;  %v4163_v27 = vor.u32 %v5200_v18, %v4160_v19  ;;  %v4096_v17 = vld [vmem:[#allocation8 + $0x310] sm:$0xf0]  ;;  %v5228_v18 = vld [vmem:[#allocation8 + $0x464] sm:$0xf] }
  0xe6   : > { %5546 = vtanh.f32 %v737_v0  ;;  %v3856_v0 = vld [vmem:[#allocation8 + $0x130] sm:$0xf0] }
  0xe7   : > { %v3859_v9 = vor.u32 %v5124_v63, %v3856_v0  ;;  %v4272_v19 = vld [vmem:[#allocation8 + $0x470] sm:$0xf0] }
  0xe8   : > { %v673_v50 = vpop.f32.mrf.mxu2  ;;  %v686_v53 = vpop.f32.mrf.mxu3 }
  0xe9   : > { %v5541_v52 = vpop.eup %5540  ;;  %v725_v59 = vpop.f32.mrf.mxu0  ;;  %v5176_v50 = vld [vmem:[#allocation8 + $0x2c4] sm:$0xf]  ;;  %v4192_v53 = vld [vmem:[#allocation8 + $0x3d0] sm:$0xf0] }
  0xea   : > { %v5543_v55 = vpop.eup %5542  ;;  %v6099_v48 = vpack.c.bf16 %v5541_v52, %v5541_v52  ;;  %v738_v1 = vpop.f32.mrf.mxu1  ;;  %v5208_v52 = vld [vmem:[#allocation8 + $0x3c4] sm:$0xf]  ;;  %v3728_v59 = vld [vmem:[#allocation8 + $0x30] sm:$0xf0]  ;;  %v4067_v61 = vor.u32 %v5176_v50, %v4064_v51 }
  0xeb   : > { %v6101_v60 = vpack.c.bf16 %v5543_v55, %v5543_v55  ;;  %v5545_v20 = vpop.eup %5544  ;;  %v489_v55 = vperm.slane %v6093_v29, 7  ;;  %v4195_v62 = vor.u32 %v5208_v52, %v4192_v53  ;;  %v5172_v1 = vld [vmem:[#allocation8 + $0x2a4] sm:$0xf]  ;;  %v4000_v53 = vld [vmem:[#allocation8 + $0x250] sm:$0xf0] }
  0xec   : > { %2336 = vmatmul.bf16.vlgmr.msrb.gmra.mxu0 %v6099_v48  ;;  %v5547_v22 = vpop.eup %5546  ;;  %v6107_v30 = vpack.c.bf16 %v5545_v20, %v5545_v20  ;;  %v5244_v20 = vld [vmem:[#allocation8 + $0x4e4] sm:$0xf] }
  0xed   : > { %2349 = vmatmul.bf16.vlgmr.msrb.gmra.mxu1 %v6101_v60  ;;  %2432 = vmatpush.bf16.msrb.mxu0 %v3827_v54  ;;  %v6109_v36 = vpack.c.bf16 %v5547_v22, %v5547_v22  ;;  %v488_v54 = vperm.slane %v6093_v29, 6  ;;  %v3731_v29 = vor.u32 %v5092_v58, %v3728_v59  ;;  %v5276_v22 = vld [vmem:[#allocation8 + $0x5e4] sm:$0xf]  ;;  %v4304_v59 = vld [vmem:[#allocation8 + $0x4b0] sm:$0xf0] }
  0xee   : > { %2445 = vmatpush.bf16.msrb.mxu1 %v3955_v56  ;;  %v3747_v56 = vor.u32 %v5096_v42, %v3744_v43  ;;  %v5272_v42 = vld [vmem:[#allocation8 + $0x5c4] sm:$0xf]  ;;  %v4448_v43 = vld [vmem:[#allocation8 + $0x5d0] sm:$0xf0] }
  0xef   : > { %v5160_v52 = vld [vmem:[#allocation8 + $0x244] sm:$0xf] }
  0xf0   : > { %v697_v10 = vpop.f32.mrf.mxu2  ;;  %v710_v12 = vpop.f32.mrf.mxu3  ;;  %v5236_v58 = vld [vmem:[#allocation8 + $0x4a4] sm:$0xf]  ;;  %v4003_v63 = vor.u32 %v5160_v52, %v4000_v53 }
  0xf1   : > { %v698_v11 = vadd.f32 %v697_v10, %v484_v2  ;;  %2433 = vmatpush.bf16.msrb.mxu0 %v3811_v3  ;;  %v711_v14 = vadd.f32 %v710_v12, %v485_v4  ;;  %v4048_v3 = vld [vmem:[#allocation8 + $0x2b0] sm:$0xf0]  ;;  %v5204_v4 = vld [vmem:[#allocation8 + $0x3a4] sm:$0xf] }
  0xf2   : > { %2446 = vmatpush.bf16.msrb.mxu1 %v3939_v5  ;;  %v4176_v5 = vld [vmem:[#allocation8 + $0x3b0] sm:$0xf0]  ;;  %v5088_v10 = vld [vmem:[#allocation8 + $0x4] sm:$0xf] }
  0xf3   : > { %5548 = vtanh.f32 %v698_v11  ;;  %v3712_v11 = vld [vmem:[#allocation8 + $0x10] sm:$0xf0]  ;;  %v5120_v12 = vld [vmem:[#allocation8 + $0x104] sm:$0xf] }
  0xf4   : > { %5550 = vtanh.f32 %v711_v14  ;;  %v4179_v14 = vor.u32 %v5204_v4, %v4176_v5  ;;  %v3715_v24 = vor.u32 %v5088_v10, %v3712_v11  ;;  %v5188_v5 = vld [vmem:[#allocation8 + $0x324] sm:$0xf] }
  0xf5   : > { %2434 = vmatpush.bf16.msrb.mxu0 %v3795_v13  ;;  %v4051_v13 = vor.u32 %v5172_v1, %v4048_v3  ;;  %v5156_v1 = vld [vmem:[#allocation8 + $0x224] sm:$0xf]  ;;  %v4307_v3 = vor.u32 %v5236_v58, %v4304_v59  ;;  %v4688_v59 = vld [vmem:[#allocation8 + $0x7b0] sm:$0xf0] }
  0xf6   : > { %2447 = vmatpush.bf16.msrb.mxu1 %v3923_v15  ;;  %v3840_v15 = vld [vmem:[#allocation8 + $0x110] sm:$0xf0]  ;;  %v5332_v58 = vld [vmem:[#allocation8 + $0x7a4] sm:$0xf] }
  0xf7   : > { %v3843_v25 = vor.u32 %v5120_v12, %v3840_v15  ;;  %v5152_v12 = vld [vmem:[#allocation8 + $0x204] sm:$0xf] }
  0xf8   : > { %v699_v31 = vpop.f32.mrf.mxu2  ;;  %v712_v37 = vpop.f32.mrf.mxu3 }
  0xf9   : > { %v5549_v35 = vpop.eup %5548  ;;  %2435 = vmatpush.bf16.msrb.mxu0 %v3779_v21  ;;  %v4336_v21 = vld [vmem:[#allocation8 + $0x4f0] sm:$0xf0] }
  0xfa   : > { %v5551_v38 = vpop.eup %5550  ;;  %v6111_v39 = vpack.c.bf16 %v5549_v35, %v5549_v35  ;;  %2448 = vmatpush.bf16.msrb.mxu1 %v3907_v23  ;;  %v4464_v23 = vld [vmem:[#allocation8 + $0x5f0] sm:$0xf0]  ;;  %v4339_v32 = vor.u32 %v5244_v20, %v4336_v21  ;;  %v5260_v20 = vld [vmem:[#allocation8 + $0x564] sm:$0xf] }
  0xfb   : > { %v6113_v44 = vpack.c.bf16 %v5551_v38, %v5551_v38  ;;  %v4016_v31 = vld [vmem:[#allocation8 + $0x270] sm:$0xf0]  ;;  %v4467_v33 = vor.u32 %v5276_v22, %v4464_v23  ;;  %v5240_v38 = vld [vmem:[#allocation8 + $0x4c4] sm:$0xf] }
  0xfc   : > { %2362 = vmatmul.bf16.vlgmr.msrb.gmra.mxu2 %v6111_v39  ;;  %2388 = vmatmul.bf16.vlgmr.msra.gmra.mxu0 %v6107_v30  ;;  %v4144_v35 = vld [vmem:[#allocation8 + $0x370] sm:$0xf0]  ;;  %v4019_v50 = vor.u32 %v5164_v28, %v4016_v31  ;;  %v5308_v22 = vld [vmem:[#allocation8 + $0x6e4] sm:$0xf]  ;;  %v4275_v28 = vor.u32 %v5228_v18, %v4272_v19 }
  0xfd   : > { %2375 = vmatmul.bf16.vlgmr.msrb.gmra.mxu3 %v6113_v44  ;;  %2401 = vmatmul.bf16.vlgmr.msra.gmra.mxu1 %v6109_v36  ;;  %v4147_v51 = vor.u32 %v5196_v34, %v4144_v35  ;;  %v4400_v21 = vld [vmem:[#allocation8 + $0x570] sm:$0xf0] }
  0xfe   : > { %2436 = vmatpush.bf16.msrb.mxu0 %v3763_v40  ;;  %2449 = vmatpush.bf16.msrb.mxu1 %v3891_v41  ;;  %v4320_v41 = vld [vmem:[#allocation8 + $0x4d0] sm:$0xf0]  ;;  %v4403_v31 = vor.u32 %v5260_v20, %v4400_v21  ;;  %v5324_v20 = vld [vmem:[#allocation8 + $0x764] sm:$0xf] }
  0xff   : > { %2458 = vmatpush.bf16.msrb.mxu2 %v4083_v45  ;;  %2471 = vmatpush.bf16.msrb.mxu3 %v4211_v46  ;;  %v4592_v23 = vld [vmem:[#allocation8 + $0x6f0] sm:$0xf0] }
 0x100   : > { %v749_v2 = vpop.f32.mrf.mxu2  ;;  %v762_v7 = vpop.f32.mrf.mxu3  ;;  %v4595_v34 = vor.u32 %v5308_v22, %v4592_v23  ;;  %v4656_v21 = vld [vmem:[#allocation8 + $0x770] sm:$0xf0]  ;;  %v3814_v22 = vld [vmem:[#allocation8 + $0xc8] sm:$0xf]  ;;  %v5115_v23 = vld [vmem:[#allocation8 + $0xd4] sm:$0xf0] }
 0x101   : > { %v750_v6 = vadd.f32 %v749_v2, %v488_v54  ;;  %v763_v8 = vadd.f32 %v762_v7, %v489_v55  ;;  %v4323_v54 = vor.u32 %v5240_v38, %v4320_v41  ;;  %v4451_v55 = vor.u32 %v5272_v42, %v4448_v43  ;;  %v3984_v2 = vld [vmem:[#allocation8 + $0x230] sm:$0xf0]  ;;  %v5232_v7 = vld [vmem:[#allocation8 + $0x484] sm:$0xf] }
 0x102   : > { %2437 = vmatpush.bf16.msrb.mxu0 %v3747_v56  ;;  %2450 = vmatpush.bf16.msrb.mxu1 %v3875_v57  ;;  %v5192_v56 = vld [vmem:[#allocation8 + $0x344] sm:$0xf]  ;;  %v4128_v57 = vld [vmem:[#allocation8 + $0x350] sm:$0xf0]  ;;  %v3987_v10 = vor.u32 %v5156_v1, %v3984_v2 }
 0x103   : > { %5552 = vtanh.f32 %v750_v6  ;;  %2459 = vmatpush.bf16.msrb.mxu2 %v4067_v61  ;;  %2472 = vmatpush.bf16.msrb.mxu3 %v4195_v62  ;;  %v5268_v61 = vld [vmem:[#allocation8 + $0x5a4] sm:$0xf]  ;;  %v4432_v62 = vld [vmem:[#allocation8 + $0x5b0] sm:$0xf0]  ;;  %v4131_v0 = vor.u32 %v5192_v56, %v4128_v57 }
 0x104   : > { %5554 = vtanh.f32 %v763_v8  ;;  %v4435_v4 = vor.u32 %v5268_v61, %v4432_v62  ;;  %v4112_v6 = vld [vmem:[#allocation8 + $0x330] sm:$0xf0]  ;;  %v5336_v42 = vld [vmem:[#allocation8 + $0x7c4] sm:$0xf] }
 0x105   : > { %v4288_v8 = vld [vmem:[#allocation8 + $0x490] sm:$0xf0]  ;;  %v4115_v11 = vor.u32 %v5188_v5, %v4112_v6  ;;  %v5300_v56 = vld [vmem:[#allocation8 + $0x6a4] sm:$0xf] }
 0x106   : > { %2438 = vmatpush.bf16.msrb.mxu0 %v3731_v29  ;;  %2451 = vmatpush.bf16.msrb.mxu1 %v3859_v9  ;;  %v5264_v29 = vld [vmem:[#allocation8 + $0x584] sm:$0xf]  ;;  %v4416_v9 = vld [vmem:[#allocation8 + $0x590] sm:$0xf0]  ;;  %v4291_v15 = vor.u32 %v5232_v7, %v4288_v8 }
 0x107   : > { %2460 = vmatpush.bf16.msrb.mxu2 %v4051_v13  ;;  %2473 = vmatpush.bf16.msrb.mxu3 %v4179_v14  ;;  %v3968_v13 = vld [vmem:[#allocation8 + $0x210] sm:$0xf0]  ;;  %v5184_v14 = vld [vmem:[#allocation8 + $0x304] sm:$0xf]  ;;  %v4419_v16 = vor.u32 %v5264_v29, %v4416_v9  ;;  %v3830_v29 = vld [vmem:[#allocation8 + $0xe8] sm:$0xf] }
 0x108   : > { %v751_v37 = vpop.f32.mrf.mxu2  ;;  %v764_v45 = vpop.f32.mrf.mxu3  ;;  %v4384_v38 = vld [vmem:[#allocation8 + $0x550] sm:$0xf0]  ;;  %v5248_v1 = vld [vmem:[#allocation8 + $0x504] sm:$0xf]  ;;  %v5119_v9 = vld [vmem:[#allocation8 + $0xf4] sm:$0xf0] }
 0x109   : > { %v5553_v40 = vpop.eup %5552  ;;  %v5256_v37 = vld [vmem:[#allocation8 + $0x544] sm:$0xf]  ;;  %v4576_v41 = vld [vmem:[#allocation8 + $0x6d0] sm:$0xf0]  ;;  %v3831_v18 = vor.u32 %v5119_v9, %v3830_v29  ;;  %v4214_v29 = vld [vmem:[#allocation8 + $0x3e8] sm:$0xf] }
 0x10a   : > { %v5555_v46 = vpop.eup %5554  ;;  %v6121_v47 = vpack.c.bf16 %v5553_v40, %v5553_v40  ;;  %2439 = vmatpush.bf16.msrb.mxu0 %v3715_v24  ;;  %2452 = vmatpush.bf16.msrb.mxu1 %v3843_v25  ;;  %v5340_v24 = vld [vmem:[#allocation8 + $0x7e4] sm:$0xf]  ;;  %v4720_v25 = vld [vmem:[#allocation8 + $0x7f0] sm:$0xf0]  ;;  %v5215_v9 = vld [vmem:[#allocation8 + $0x3f4] sm:$0xf0] }
 0x10b   : > { %v6123_v49 = vpack.c.bf16 %v5555_v46, %v5555_v46  ;;  %2461 = vmatpush.bf16.msrb.mxu2 %v4035_v26  ;;  %2474 = vmatpush.bf16.msrb.mxu3 %v4163_v27  ;;  %v3971_v26 = vor.u32 %v5152_v12, %v3968_v13  ;;  %v4099_v27 = vor.u32 %v5184_v14, %v4096_v17  ;;  %v5304_v40 = vld [vmem:[#allocation8 + $0x6c4] sm:$0xf]  ;;  %v4704_v43 = vld [vmem:[#allocation8 + $0x7d0] sm:$0xf0] }
 0x10c   : > { %2414 = vmatmul.bf16.vlgmr.msra.gmra.mxu2 %v6121_v47  ;;  %v4723_v35 = vor.u32 %v5340_v24, %v4720_v25  ;;  %v4387_v46 = vor.u32 %v5256_v37, %v4384_v38  ;;  %v4579_v52 = vor.u32 %v5304_v40, %v4576_v41  ;;  %v4707_v53 = vor.u32 %v5336_v42, %v4704_v43  ;;  %v4560_v57 = vld [vmem:[#allocation8 + $0x6b0] sm:$0xf0]  ;;  %v5296_v5 = vld [vmem:[#allocation8 + $0x684] sm:$0xf]  ;;  %v3942_v24 = vld [vmem:[#allocation8 + $0x1c8] sm:$0xf] }
 0x10d   : > { %2427 = vmatmul.bf16.vlgmr.msra.gmra.mxu3 %v6123_v49  ;;  %2440 = vmatmul.bf16.vlgmr.msrb.gmra.mxu0 %v6099_v48  ;;  %v4563_v2 = vor.u32 %v5300_v56, %v4560_v57  ;;  %v4544_v6 = vld [vmem:[#allocation8 + $0x690] sm:$0xf0]  ;;  %v5328_v7 = vld [vmem:[#allocation8 + $0x784] sm:$0xf]  ;;  %v5147_v25 = vld [vmem:[#allocation8 + $0x1d4] sm:$0xf0] }
 0x10e   : > { %2484 = vmatpush.bf16.msra.mxu0 %v4339_v32  ;;  %2497 = vmatpush.bf16.msra.mxu1 %v4467_v33  ;;  %v5224_v32 = vld [vmem:[#allocation8 + $0x444] sm:$0xf]  ;;  %v4256_v33 = vld [vmem:[#allocation8 + $0x450] sm:$0xf0]  ;;  %v4547_v14 = vor.u32 %v5296_v5, %v4544_v6  ;;  %v3798_v37 = vld [vmem:[#allocation8 + $0xa8] sm:$0xf] }
 0x10f   : > { %2453 = vmatmul.bf16.vlgmr.msrb.gmra.mxu1 %v6101_v60  ;;  %2462 = vmatpush.bf16.msrb.mxu2 %v4019_v50  ;;  %v4259_v45 = vor.u32 %v5224_v32, %v4256_v33  ;;  %v5220_v50 = vld [vmem:[#allocation8 + $0x424] sm:$0xf]  ;;  %v4672_v8 = vld [vmem:[#allocation8 + $0x790] sm:$0xf0]  ;;  %v3815_v32 = vor.u32 %v5115_v23, %v3814_v22  ;;  %v3943_v33 = vor.u32 %v5147_v25, %v3942_v24  ;;  %v5111_v38 = vld [vmem:[#allocation8 + $0xb4] sm:$0xf0] }
 0x110   : > { %2475 = vmatpush.bf16.msrb.mxu3 %v4147_v51  ;;  %v4240_v51 = vld [vmem:[#allocation8 + $0x430] sm:$0xf0]  ;;  %v3926_v40 = vld [vmem:[#allocation8 + $0x1a8] sm:$0xf]  ;;  %v5143_v41 = vld [vmem:[#allocation8 + $0x1b4] sm:$0xf0] }
 0x111   : > { %v4243_v61 = vor.u32 %v5220_v50, %v4240_v51  ;;  %v4528_v17 = vld [vmem:[#allocation8 + $0x670] sm:$0xf0]  ;;  %v3799_v50 = vor.u32 %v5111_v38, %v3798_v37  ;;  %v3927_v51 = vor.u32 %v5143_v41, %v3926_v40  ;;  %v3910_v56 = vld [vmem:[#allocation8 + $0x188] sm:$0xf]  ;;  %v5139_v57 = vld [vmem:[#allocation8 + $0x194] sm:$0xf0] }
 0x112   : > { %2485 = vmatpush.bf16.msra.mxu0 %v4323_v54  ;;  %2498 = vmatpush.bf16.msra.mxu1 %v4451_v55  ;;  %v5252_v54 = vld [vmem:[#allocation8 + $0x524] sm:$0xf]  ;;  %v4368_v55 = vld [vmem:[#allocation8 + $0x530] sm:$0xf0]  ;;  %v3894_v5 = vld [vmem:[#allocation8 + $0x168] sm:$0xf] }
 0x113   : > { %2463 = vmatpush.bf16.msrb.mxu2 %v4003_v63  ;;  %v4371_v62 = vor.u32 %v5252_v54, %v4368_v55  ;;  %v5216_v63 = vld [vmem:[#allocation8 + $0x404] sm:$0xf]  ;;  %v3782_v54 = vld [vmem:[#allocation8 + $0x88] sm:$0xf]  ;;  %v5107_v55 = vld [vmem:[#allocation8 + $0x94] sm:$0xf0] }
 0x114   : > { %2476 = vmatpush.bf16.msrb.mxu3 %v4131_v0  ;;  %v4224_v0 = vld [vmem:[#allocation8 + $0x410] sm:$0xf0]  ;;  %v5135_v6 = vld [vmem:[#allocation8 + $0x174] sm:$0xf0]  ;;  %v4198_v22 = vld [vmem:[#allocation8 + $0x3c8] sm:$0xf] }
 0x115   : > { %v4227_v12 = vor.u32 %v5216_v63, %v4224_v0  ;;  %v5312_v63 = vld [vmem:[#allocation8 + $0x704] sm:$0xf]  ;;  %v3783_v0 = vor.u32 %v5107_v55, %v3782_v54  ;;  %v5211_v23 = vld [vmem:[#allocation8 + $0x3d4] sm:$0xf0]  ;;  %v4182_v37 = vld [vmem:[#allocation8 + $0x3a8] sm:$0xf] }
 0x116   : > { %2486 = vmatpush.bf16.msra.mxu0 %v4307_v3  ;;  %2499 = vmatpush.bf16.msra.mxu1 %v4435_v4  ;;  %v4691_v3 = vor.u32 %v5332_v58, %v4688_v59  ;;  %v4352_v4 = vld [vmem:[#allocation8 + $0x510] sm:$0xf0]  ;;  %v5207_v38 = vld [vmem:[#allocation8 + $0x3b4] sm:$0xf0]  ;;  %v4166_v54 = vld [vmem:[#allocation8 + $0x388] sm:$0xf] }
 0x117   : > { %2464 = vmatpush.bf16.msrb.mxu2 %v3987_v10  ;;  %v3958_v10 = vld [vmem:[#allocation8 + $0x1e8] sm:$0xf]  ;;  %v4355_v13 = vor.u32 %v5248_v1, %v4352_v4  ;;  %v3911_v1 = vor.u32 %v5139_v57, %v3910_v56  ;;  %v5103_v4 = vld [vmem:[#allocation8 + $0x74] sm:$0xf0] }
 0x118   : > { %2477 = vmatpush.bf16.msrb.mxu3 %v4115_v11  ;;  %v5151_v11 = vld [vmem:[#allocation8 + $0x1f4] sm:$0xf0]  ;;  %v4342_v56 = vld [vmem:[#allocation8 + $0x4e8] sm:$0xf] }
 0x119   : > { %v3959_v19 = vor.u32 %v5151_v11, %v3958_v10  ;;  %v5203_v55 = vld [vmem:[#allocation8 + $0x394] sm:$0xf0] }
 0x11a   : > { %2487 = vmatpush.bf16.msra.mxu0 %v4291_v15  ;;  %2500 = vmatpush.bf16.msra.mxu1 %v4419_v16  ;;  %v4675_v15 = vor.u32 %v5328_v7, %v4672_v8  ;;  %v5292_v16 = vld [vmem:[#allocation8 + $0x664] sm:$0xf]  ;;  %v4086_v7 = vld [vmem:[#allocation8 + $0x2e8] sm:$0xf]  ;;  %v5183_v8 = vld [vmem:[#allocation8 + $0x2f4] sm:$0xf0] }
 0x11b   : > { %2465 = vmatpush.bf16.msrb.mxu2 %v3971_v26  ;;  %v4531_v26 = vor.u32 %v5292_v16, %v4528_v17  ;;  %v4087_v16 = vor.u32 %v5183_v8, %v4086_v7  ;;  %v4215_v17 = vor.u32 %v5215_v9, %v4214_v29  ;;  %v5247_v57 = vld [vmem:[#allocation8 + $0x4f4] sm:$0xf0]  ;;  %v4326_v7 = vld [vmem:[#allocation8 + $0x4c8] sm:$0xf] }
 0x11c   : > { %2478 = vmatpush.bf16.msrb.mxu3 %v4099_v27  ;;  %v4659_v27 = vor.u32 %v5324_v20, %v4656_v21  ;;  %v4070_v20 = vld [vmem:[#allocation8 + $0x2c8] sm:$0xf]  ;;  %v5179_v21 = vld [vmem:[#allocation8 + $0x2d4] sm:$0xf0] }
 0x11d   : > { %v5243_v8 = vld [vmem:[#allocation8 + $0x4d4] sm:$0xf0]  ;;  %v4454_v29 = vld [vmem:[#allocation8 + $0x5c8] sm:$0xf] }
 0x11e   : > { %2488 = vmatpush.bf16.msra.mxu0 %v4275_v28  ;;  %2501 = vmatpush.bf16.msra.mxu1 %v4403_v31  ;;  %v5288_v28 = vld [vmem:[#allocation8 + $0x644] sm:$0xf]  ;;  %v4512_v31 = vld [vmem:[#allocation8 + $0x650] sm:$0xf0]  ;;  %v5275_v9 = vld [vmem:[#allocation8 + $0x5d4] sm:$0xf0] }
 0x11f   : > { %2510 = vmatpush.bf16.msra.mxu2 %v4595_v34  ;;  %2479 = vmatmul.bf16.vlgmr.msrb.gmra.mxu3 %v6113_v44  ;;  %v5320_v34 = vld [vmem:[#allocation8 + $0x744] sm:$0xf]  ;;  %v4515_v42 = vor.u32 %v5288_v28, %v4512_v31  ;;  %v4071_v28 = vor.u32 %v5179_v21, %v4070_v20  ;;  %v4199_v31 = vor.u32 %v5211_v23, %v4198_v22  ;;  %v4438_v20 = vld [vmem:[#allocation8 + $0x5a8] sm:$0xf]  ;;  %v5271_v21 = vld [vmem:[#allocation8 + $0x5b4] sm:$0xf0] }
 0x120   : > { %2523 = vmatpush.bf16.msra.mxu3 %v4723_v35  ;;  %2466 = vmatmul.bf16.vlgmr.msrb.gmra.mxu2 %v6111_v39  ;;  %v4640_v35 = vld [vmem:[#allocation8 + $0x750] sm:$0xf0] }
 0x121   : > { %v4643_v43 = vor.u32 %v5320_v34, %v4640_v35  ;;  %v4054_v34 = vld [vmem:[#allocation8 + $0x2a8] sm:$0xf]  ;;  %v5175_v35 = vld [vmem:[#allocation8 + $0x2b4] sm:$0xf0] }
 0x122   : > { %2489 = vmatpush.bf16.msra.mxu0 %v4259_v45  ;;  %2502 = vmatpush.bf16.msra.mxu1 %v4387_v46  ;;  %v5284_v45 = vld [vmem:[#allocation8 + $0x624] sm:$0xf]  ;;  %v4496_v46 = vld [vmem:[#allocation8 + $0x630] sm:$0xf0] }
 0x123   : > { %2511 = vmatpush.bf16.msra.mxu2 %v4579_v52  ;;  %v5316_v52 = vld [vmem:[#allocation8 + $0x724] sm:$0xf]  ;;  %v4499_v58 = vor.u32 %v5284_v45, %v4496_v46  ;;  %v3846_v45 = vld [vmem:[#allocation8 + $0x108] sm:$0xf]  ;;  %v4055_v46 = vor.u32 %v5175_v35, %v4054_v34  ;;  %v5267_v35 = vld [vmem:[#allocation8 + $0x594] sm:$0xf0] }
 0x124   : > { %2524 = vmatpush.bf16.msra.mxu3 %v4707_v53  ;;  %v4624_v53 = vld [vmem:[#allocation8 + $0x730] sm:$0xf0]  ;;  %v4422_v34 = vld [vmem:[#allocation8 + $0x588] sm:$0xf] }
 0x125   : > { %v4627_v59 = vor.u32 %v5316_v52, %v4624_v53  ;;  %v4038_v52 = vld [vmem:[#allocation8 + $0x288] sm:$0xf]  ;;  %v5171_v53 = vld [vmem:[#allocation8 + $0x294] sm:$0xf0] }
 0x126   : > { %2490 = vmatpush.bf16.msra.mxu0 %v4243_v61  ;;  %2503 = vmatpush.bf16.msra.mxu1 %v4371_v62  ;;  %v5280_v61 = vld [vmem:[#allocation8 + $0x604] sm:$0xf]  ;;  %v4480_v62 = vld [vmem:[#allocation8 + $0x610] sm:$0xf0] }
 0x127   : > { %2512 = vmatpush.bf16.msra.mxu2 %v4563_v2  ;;  %v4608_v2 = vld [vmem:[#allocation8 + $0x710] sm:$0xf0]  ;;  %v4483_v10 = vor.u32 %v5280_v61, %v4480_v62 }
 0x128   : > { %2525 = vmatpush.bf16.msra.mxu3 %v4691_v3  ;;  %v3766_v3 = vld [vmem:[#allocation8 + $0x68] sm:$0xf]  ;;  %v4611_v11 = vor.u32 %v5312_v63, %v4608_v2  ;;  %v4039_v63 = vor.u32 %v5171_v53, %v4038_v52  ;;  %v5167_v2 = vld [vmem:[#allocation8 + $0x274] sm:$0xf0] }
 0x129   : > { %v4406_v52 = vld [vmem:[#allocation8 + $0x568] sm:$0xf]  ;;  %v5263_v53 = vld [vmem:[#allocation8 + $0x574] sm:$0xf0] }
 0x12a   : > { %2491 = vmatpush.bf16.msra.mxu0 %v4227_v12  ;;  %2504 = vmatpush.bf16.msra.mxu1 %v4355_v13  ;;  %v3767_v12 = vor.u32 %v5103_v4, %v3766_v3  ;;  %v3895_v13 = vor.u32 %v5135_v6, %v3894_v5  ;;  %v4343_v3 = vor.u32 %v5247_v57, %v4342_v56  ;;  %v4150_v5 = vld [vmem:[#allocation8 + $0x368] sm:$0xf]  ;;  %v5199_v6 = vld [vmem:[#allocation8 + $0x374] sm:$0xf0] }
 0x12b   : > { %2513 = vmatpush.bf16.msra.mxu2 %v4547_v14  ;;  %v3750_v14 = vld [vmem:[#allocation8 + $0x48] sm:$0xf]  ;;  %v5343_v57 = vld [vmem:[#allocation8 + $0x7f4] sm:$0xf0] }
 0x12c   : > { %2526 = vmatpush.bf16.msra.mxu3 %v4675_v15  ;;  %v5099_v15 = vld [vmem:[#allocation8 + $0x54] sm:$0xf0]  ;;  %v4726_v56 = vld [vmem:[#allocation8 + $0x7e8] sm:$0xf] }
 0x12d   : > { %2492 = vmatmul.bf16.vlgmr.msra.gmra.mxu0 %v6107_v30  ;;  %2505 = vmatmul.bf16.vlgmr.msra.gmra.mxu1 %v6109_v36  ;;  %v3751_v24 = vor.u32 %v5099_v15, %v3750_v14  ;;  %v4327_v14 = vor.u32 %v5243_v8, %v4326_v7  ;;  %v4455_v15 = vor.u32 %v5275_v9, %v4454_v29  ;;  %v4710_v7 = vld [vmem:[#allocation8 + $0x7c8] sm:$0xf]  ;;  %v5339_v8 = vld [vmem:[#allocation8 + $0x7d4] sm:$0xf0] }
 0x12e   : > { %2536 = vmatpush.bf16.msrb.mxu0 %v3831_v18  ;;  %2549 = vmatpush.bf16.msrb.mxu1 %v3959_v19  ;;  %v3878_v18 = vld [vmem:[#allocation8 + $0x148] sm:$0xf]  ;;  %v5131_v19 = vld [vmem:[#allocation8 + $0x154] sm:$0xf0] }
 0x12f   : > { %2514 = vmatpush.bf16.msra.mxu2 %v4531_v26  ;;  %v3879_v25 = vor.u32 %v5131_v19, %v3878_v18  ;;  %v3734_v26 = vld [vmem:[#allocation8 + $0x28] sm:$0xf]  ;;  %v5239_v19 = vld [vmem:[#allocation8 + $0x4b4] sm:$0xf0] }
 0x130   : > { %2527 = vmatpush.bf16.msra.mxu3 %v4659_v27  ;;  %v5095_v27 = vld [vmem:[#allocation8 + $0x34] sm:$0xf0]  ;;  %v4310_v18 = vld [vmem:[#allocation8 + $0x4a8] sm:$0xf] }
 0x131   : > { %v3735_v40 = vor.u32 %v5095_v27, %v3734_v26  ;;  %v4311_v26 = vor.u32 %v5239_v19, %v4310_v18  ;;  %v4439_v27 = vor.u32 %v5271_v21, %v4438_v20  ;;  %v4694_v18 = vld [vmem:[#allocation8 + $0x7a8] sm:$0xf]  ;;  %v5335_v19 = vld [vmem:[#allocation8 + $0x7b4] sm:$0xf0] }
 0x132   : > { %2537 = vmatpush.bf16.msrb.mxu0 %v3815_v32  ;;  %2550 = vmatpush.bf16.msrb.mxu1 %v3943_v33  ;;  %v3862_v32 = vld [vmem:[#allocation8 + $0x128] sm:$0xf]  ;;  %v5127_v33 = vld [vmem:[#allocation8 + $0x134] sm:$0xf0] }
 0x133   : > { %2515 = vmatpush.bf16.msra.mxu2 %v4515_v42  ;;  %v3863_v41 = vor.u32 %v5127_v33, %v3862_v32  ;;  %v3718_v42 = vld [vmem:[#allocation8 + $0x8] sm:$0xf]  ;;  %v5235_v33 = vld [vmem:[#allocation8 + $0x494] sm:$0xf0] }
 0x134   : > { %2528 = vmatpush.bf16.msra.mxu3 %v4643_v43  ;;  %v5091_v43 = vld [vmem:[#allocation8 + $0x14] sm:$0xf0]  ;;  %v4294_v32 = vld [vmem:[#allocation8 + $0x488] sm:$0xf] }
 0x135   : > { %v3719_v61 = vor.u32 %v5091_v43, %v3718_v42  ;;  %v4102_v42 = vld [vmem:[#allocation8 + $0x308] sm:$0xf]  ;;  %v4295_v43 = vor.u32 %v5235_v33, %v4294_v32  ;;  %v5331_v33 = vld [vmem:[#allocation8 + $0x794] sm:$0xf0] }
 0x136   : > { %2538 = vmatpush.bf16.msrb.mxu0 %v3799_v50  ;;  %2551 = vmatpush.bf16.msrb.mxu1 %v3927_v51  ;;  %v4183_v50 = vor.u32 %v5207_v38, %v4182_v37  ;;  %v5123_v51 = vld [vmem:[#allocation8 + $0x114] sm:$0xf0]  ;;  %v4678_v32 = vld [vmem:[#allocation8 + $0x788] sm:$0xf] }
 0x137   : > { %2516 = vmatpush.bf16.msra.mxu2 %v4499_v58  ;;  %v4470_v58 = vld [vmem:[#allocation8 + $0x5e8] sm:$0xf]  ;;  %v3847_v62 = vor.u32 %v5123_v51, %v3846_v45  ;;  %v4423_v45 = vor.u32 %v5267_v35, %v4422_v34  ;;  %v5231_v51 = vld [vmem:[#allocation8 + $0x474] sm:$0xf0]  ;;  %v5117_v34 = vld [vmem:[#allocation8 + $0xec] sm:$0xf] }
 0x138   : > { %2529 = vmatpush.bf16.msra.mxu3 %v4627_v59  ;;  %v5279_v59 = vld [vmem:[#allocation8 + $0x5f4] sm:$0xf0]  ;;  %v3832_v35 = vld [vmem:[#allocation8 + $0xf8] sm:$0xf0] }
 0x139   : > { %v4471_v4 = vor.u32 %v5279_v59, %v4470_v58 }
 0x13a   : > { %2539 = vmatpush.bf16.msrb.mxu0 %v3783_v0  ;;  %2552 = vmatpush.bf16.msrb.mxu1 %v3911_v1  ;;  %v4167_v0 = vor.u32 %v5203_v55, %v4166_v54  ;;  %v4022_v1 = vld [vmem:[#allocation8 + $0x268] sm:$0xf]  ;;  %v5311_v55 = vld [vmem:[#allocation8 + $0x6f4] sm:$0xf0] }
 0x13b   : > { %2517 = vmatpush.bf16.msra.mxu2 %v4483_v10  ;;  %v4023_v10 = vor.u32 %v5167_v2, %v4022_v1  ;;  %v4598_v54 = vld [vmem:[#allocation8 + $0x6e8] sm:$0xf]  ;;  %v4727_v2 = vor.u32 %v5343_v57, %v4726_v56  ;;  %v5145_v56 = vld [vmem:[#allocation8 + $0x1cc] sm:$0xf]  ;;  %v3944_v57 = vld [vmem:[#allocation8 + $0x1d8] sm:$0xf0] }
 0x13c   : > { %2530 = vmatpush.bf16.msra.mxu3 %v4611_v11  ;;  %v4151_v11 = vor.u32 %v5199_v6, %v4150_v5  ;;  %v4599_v1 = vor.u32 %v5311_v55, %v4598_v54  ;;  %v4582_v5 = vld [vmem:[#allocation8 + $0x6c8] sm:$0xf]  ;;  %v5307_v6 = vld [vmem:[#allocation8 + $0x6d4] sm:$0xf0]  ;;  %v5113_v54 = vld [vmem:[#allocation8 + $0xcc] sm:$0xf] }
 0x13d   : > { %v3816_v55 = vld [vmem:[#allocation8 + $0xd8] sm:$0xf0] }
 0x13e   : > { %2540 = vmatpush.bf16.msrb.mxu0 %v3767_v12  ;;  %2553 = vmatpush.bf16.msrb.mxu1 %v3895_v13  ;;  %v4006_v12 = vld [vmem:[#allocation8 + $0x248] sm:$0xf]  ;;  %v5163_v13 = vld [vmem:[#allocation8 + $0x254] sm:$0xf0] }
 0x13f   : > { %2562 = vmatpush.bf16.msrb.mxu2 %v4087_v16  ;;  %2531 = vmatmul.bf16.vlgmr.msra.gmra.mxu3 %v6123_v49  ;;  %v4134_v16 = vld [vmem:[#allocation8 + $0x348] sm:$0xf]  ;;  %v4007_v22 = vor.u32 %v5163_v13, %v4006_v12  ;;  %v4583_v12 = vor.u32 %v5307_v6, %v4582_v5  ;;  %v4711_v13 = vor.u32 %v5339_v8, %v4710_v7  ;;  %v5141_v5 = vld [vmem:[#allocation8 + $0x1ac] sm:$0xf]  ;;  %v3928_v6 = vld [vmem:[#allocation8 + $0x1b8] sm:$0xf0] }
 0x140   : > { %2575 = vmatpush.bf16.msrb.mxu3 %v4215_v17  ;;  %2518 = vmatmul.bf16.vlgmr.msra.gmra.mxu2 %v6121_v47  ;;  %v5195_v17 = vld [vmem:[#allocation8 + $0x354] sm:$0xf0] }
 0x141   : > { %v4135_v23 = vor.u32 %v5195_v17, %v4134_v16  ;;  %v4566_v16 = vld [vmem:[#allocation8 + $0x6a8] sm:$0xf]  ;;  %v5303_v17 = vld [vmem:[#allocation8 + $0x6b4] sm:$0xf0] }
 0x142   : > { %2541 = vmatpush.bf16.msrb.mxu0 %v3751_v24  ;;  %2554 = vmatpush.bf16.msrb.mxu1 %v3879_v25  ;;  %v3990_v24 = vld [vmem:[#allocation8 + $0x228] sm:$0xf]  ;;  %v5159_v25 = vld [vmem:[#allocation8 + $0x234] sm:$0xf0] }
 0x143   : > { %2563 = vmatpush.bf16.msrb.mxu2 %v4071_v28  ;;  %v4118_v28 = vld [vmem:[#allocation8 + $0x328] sm:$0xf]  ;;  %v3991_v37 = vor.u32 %v5159_v25, %v3990_v24  ;;  %v4567_v25 = vor.u32 %v5303_v17, %v4566_v16  ;;  %v5105_v16 = vld [vmem:[#allocation8 + $0x8c] sm:$0xf]  ;;  %v3784_v17 = vld [vmem:[#allocation8 + $0x98] sm:$0xf0] }
 0x144   : > { %2576 = vmatpush.bf16.msrb.mxu3 %v4199_v31  ;;  %v5191_v31 = vld [vmem:[#allocation8 + $0x334] sm:$0xf0]  ;;  %v4358_v24 = vld [vmem:[#allocation8 + $0x508] sm:$0xf] }
 0x145   : > { %v4119_v38 = vor.u32 %v5191_v31, %v4118_v28  ;;  %v4550_v28 = vld [vmem:[#allocation8 + $0x688] sm:$0xf]  ;;  %v5299_v31 = vld [vmem:[#allocation8 + $0x694] sm:$0xf0] }
 0x146   : > { %2542 = vmatpush.bf16.msrb.mxu0 %v3735_v40  ;;  %2555 = vmatpush.bf16.msrb.mxu1 %v3863_v41  ;;  %v3974_v40 = vld [vmem:[#allocation8 + $0x208] sm:$0xf]  ;;  %v5155_v41 = vld [vmem:[#allocation8 + $0x214] sm:$0xf0] }
 0x147   : > { %2564 = vmatpush.bf16.msrb.mxu2 %v4055_v46  ;;  %v5187_v46 = vld [vmem:[#allocation8 + $0x314] sm:$0xf0]  ;;  %v3975_v58 = vor.u32 %v5155_v41, %v3974_v40 }
 0x148   : > { %2577 = vmatpush.bf16.msrb.mxu3 %v4183_v50  ;;  %v4278_v50 = vld [vmem:[#allocation8 + $0x468] sm:$0xf]  ;;  %v4103_v59 = vor.u32 %v5187_v46, %v4102_v42  ;;  %v4551_v42 = vor.u32 %v5299_v31, %v4550_v28  ;;  %v5295_v46 = vld [vmem:[#allocation8 + $0x674] sm:$0xf0]  ;;  %v5101_v28 = vld [vmem:[#allocation8 + $0x6c] sm:$0xf] }
 0x149   : > { %v3768_v31 = vld [vmem:[#allocation8 + $0x78] sm:$0xf0] }
 0x14a   : > { %2543 = vmatpush.bf16.msrb.mxu0 %v3719_v61  ;;  %2556 = vmatpush.bf16.msrb.mxu1 %v3847_v62  ;;  %v4279_v61 = vor.u32 %v5231_v51, %v4278_v50  ;;  %v4407_v62 = vor.u32 %v5263_v53, %v4406_v52  ;;  %v3835_v50 = vor.u32 %v5117_v34, %v3832_v35  ;;  %v4662_v52 = vld [vmem:[#allocation8 + $0x768] sm:$0xf]  ;;  %v5327_v53 = vld [vmem:[#allocation8 + $0x774] sm:$0xf0]  ;;  %v5181_v34 = vld [vmem:[#allocation8 + $0x2ec] sm:$0xf] }
 0x14b   : > { %2565 = vmatpush.bf16.msrb.mxu2 %v4039_v63  ;;  %v4262_v63 = vld [vmem:[#allocation8 + $0x448] sm:$0xf]  ;;  %v4088_v35 = vld [vmem:[#allocation8 + $0x2f8] sm:$0xf0] }
 0x14c   : > { %2578 = vmatpush.bf16.msrb.mxu3 %v4167_v0  ;;  %v5227_v0 = vld [vmem:[#allocation8 + $0x454] sm:$0xf0] }
 0x14d   : > { %2544 = vmatmul.bf16.vlgmr.msrb.gmra.mxu0 %v6099_v48  ;;  %2557 = vmatmul.bf16.vlgmr.msrb.gmra.mxu1 %v6101_v60  ;;  %v4263_v29 = vor.u32 %v5227_v0, %v4262_v63  ;;  %v3819_v63 = vor.u32 %v5113_v54, %v3816_v55  ;;  %v3947_v0 = vor.u32 %v5145_v56, %v3944_v57  ;;  %v5129_v54 = vld [vmem:[#allocation8 + $0x14c] sm:$0xf]  ;;  %v3880_v55 = vld [vmem:[#allocation8 + $0x158] sm:$0xf0] }
 0x14e   : > { %2588 = vmatpush.bf16.msra.mxu0 %v4343_v3  ;;  %2601 = vmatpush.bf16.msra.mxu1 %v4471_v4  ;;  %v4390_v3 = vld [vmem:[#allocation8 + $0x548] sm:$0xf]  ;;  %v5259_v4 = vld [vmem:[#allocation8 + $0x554] sm:$0xf0]  ;;  %v5177_v56 = vld [vmem:[#allocation8 + $0x2cc] sm:$0xf] }
 0x14f   : > { %2566 = vmatpush.bf16.msrb.mxu2 %v4023_v10  ;;  %v4391_v9 = vor.u32 %v5259_v4, %v4390_v3  ;;  %v4246_v10 = vld [vmem:[#allocation8 + $0x428] sm:$0xf]  ;;  %v5109_v3 = vld [vmem:[#allocation8 + $0xac] sm:$0xf]  ;;  %v3800_v4 = vld [vmem:[#allocation8 + $0xb8] sm:$0xf0] }
 0x150   : > { %2579 = vmatpush.bf16.msrb.mxu3 %v4151_v11  ;;  %v5223_v11 = vld [vmem:[#allocation8 + $0x434] sm:$0xf0]  ;;  %v4072_v57 = vld [vmem:[#allocation8 + $0x2d8] sm:$0xf0] }
 0x151   : > { %v4247_v20 = vor.u32 %v5223_v11, %v4246_v10  ;;  %v5287_v10 = vld [vmem:[#allocation8 + $0x634] sm:$0xf0]  ;;  %v3803_v11 = vor.u32 %v5109_v3, %v3800_v4  ;;  %v5125_v3 = vld [vmem:[#allocation8 + $0x12c] sm:$0xf]  ;;  %v3864_v4 = vld [vmem:[#allocation8 + $0x138] sm:$0xf0] }
 0x152   : > { %2589 = vmatpush.bf16.msra.mxu0 %v4327_v14  ;;  %2602 = vmatpush.bf16.msra.mxu1 %v4455_v15  ;;  %v4374_v14 = vld [vmem:[#allocation8 + $0x528] sm:$0xf]  ;;  %v5255_v15 = vld [vmem:[#allocation8 + $0x534] sm:$0xf0] }
 0x153   : > { %2567 = vmatpush.bf16.msrb.mxu2 %v4007_v22  ;;  %v4375_v21 = vor.u32 %v5255_v15, %v4374_v14  ;;  %v4230_v22 = vld [vmem:[#allocation8 + $0x408] sm:$0xf]  ;;  %v5319_v15 = vld [vmem:[#allocation8 + $0x734] sm:$0xf0] }
 0x154   : > { %2580 = vmatpush.bf16.msrb.mxu3 %v4135_v23  ;;  %v5219_v23 = vld [vmem:[#allocation8 + $0x414] sm:$0xf0]  ;;  %v4630_v14 = vld [vmem:[#allocation8 + $0x728] sm:$0xf] }
 0x155   : > { %v4231_v40 = vor.u32 %v5219_v23, %v4230_v22  ;;  %v4486_v22 = vld [vmem:[#allocation8 + $0x608] sm:$0xf]  ;;  %v5283_v23 = vld [vmem:[#allocation8 + $0x614] sm:$0xf0] }
 0x156   : > { %2590 = vmatpush.bf16.msra.mxu0 %v4311_v26  ;;  %2603 = vmatpush.bf16.msra.mxu1 %v4439_v27  ;;  %v4695_v26 = vor.u32 %v5335_v19, %v4694_v18  ;;  %v5251_v27 = vld [vmem:[#allocation8 + $0x514] sm:$0xf0]  ;;  %v5137_v18 = vld [vmem:[#allocation8 + $0x18c] sm:$0xf]  ;;  %v3912_v19 = vld [vmem:[#allocation8 + $0x198] sm:$0xf0] }
 0x157   : > { %2568 = vmatpush.bf16.msrb.mxu2 %v3991_v37  ;;  %v5149_v37 = vld [vmem:[#allocation8 + $0x1ec] sm:$0xf]  ;;  %v4359_v41 = vor.u32 %v5251_v27, %v4358_v24  ;;  %v4614_v24 = vld [vmem:[#allocation8 + $0x708] sm:$0xf]  ;;  %v5315_v27 = vld [vmem:[#allocation8 + $0x714] sm:$0xf0] }
 0x158   : > { %2581 = vmatpush.bf16.msrb.mxu3 %v4119_v38  ;;  %v3960_v38 = vld [vmem:[#allocation8 + $0x1f8] sm:$0xf0] }
 0x159   : > { %v3963_v51 = vor.u32 %v5149_v37, %v3960_v38  ;;  %v5213_v37 = vld [vmem:[#allocation8 + $0x3ec] sm:$0xf]  ;;  %v4216_v38 = vld [vmem:[#allocation8 + $0x3f8] sm:$0xf0] }
 0x15a   : > { %2591 = vmatpush.bf16.msra.mxu0 %v4295_v43  ;;  %2604 = vmatpush.bf16.msra.mxu1 %v4423_v45  ;;  %v4679_v43 = vor.u32 %v5331_v33, %v4678_v32  ;;  %v4534_v45 = vld [vmem:[#allocation8 + $0x668] sm:$0xf]  ;;  %v5133_v32 = vld [vmem:[#allocation8 + $0x16c] sm:$0xf]  ;;  %v3896_v33 = vld [vmem:[#allocation8 + $0x178] sm:$0xf0] }
 0x15b   : > { %2569 = vmatpush.bf16.msrb.mxu2 %v3975_v58  ;;  %v4535_v58 = vor.u32 %v5295_v46, %v4534_v45  ;;  %v3899_v45 = vor.u32 %v5133_v32, %v3896_v33 }
 0x15c   : > { %2582 = vmatpush.bf16.msrb.mxu3 %v4103_v59  ;;  %v4663_v59 = vor.u32 %v5327_v53, %v4662_v52  ;;  %v4091_v52 = vor.u32 %v5181_v34, %v4088_v35  ;;  %v4219_v53 = vor.u32 %v5213_v37, %v4216_v38  ;;  %v5165_v35 = vld [vmem:[#allocation8 + $0x26c] sm:$0xf]  ;;  %v4024_v37 = vld [vmem:[#allocation8 + $0x278] sm:$0xf0] }
 0x15e   : > { %2592 = vmatpush.bf16.msra.mxu0 %v4279_v61  ;;  %2605 = vmatpush.bf16.msra.mxu1 %v4407_v62  ;;  %v4518_v61 = vld [vmem:[#allocation8 + $0x648] sm:$0xf]  ;;  %v5291_v62 = vld [vmem:[#allocation8 + $0x654] sm:$0xf0] }
 0x15f   : > { %2614 = vmatpush.bf16.msra.mxu2 %v4599_v1  ;;  %2583 = vmatmul.bf16.vlgmr.msrb.gmra.mxu3 %v6113_v44  ;;  %v4646_v1 = vld [vmem:[#allocation8 + $0x748] sm:$0xf]  ;;  %v4519_v7 = vor.u32 %v5291_v62, %v4518_v61  ;;  %v3883_v62 = vor.u32 %v5129_v54, %v3880_v55  ;;  %v4027_v54 = vor.u32 %v5165_v35, %v4024_v37  ;;  %v5309_v35 = vld [vmem:[#allocation8 + $0x6ec] sm:$0xf]  ;;  %v4600_v37 = vld [vmem:[#allocation8 + $0x6f8] sm:$0xf0] }
 0x160   : > { %2627 = vmatpush.bf16.msra.mxu3 %v4727_v2  ;;  %2570 = vmatmul.bf16.vlgmr.msrb.gmra.mxu2 %v6111_v39  ;;  %v5323_v2 = vld [vmem:[#allocation8 + $0x754] sm:$0xf0] }
 0x161   : > { %v4647_v8 = vor.u32 %v5323_v2, %v4646_v1  ;;  %v4075_v1 = vor.u32 %v5177_v56, %v4072_v57  ;;  %v5161_v56 = vld [vmem:[#allocation8 + $0x24c] sm:$0xf]  ;;  %v4008_v57 = vld [vmem:[#allocation8 + $0x258] sm:$0xf0] }
 0x162   : > { %2593 = vmatpush.bf16.msra.mxu0 %v4263_v29  ;;  %2606 = vmatpush.bf16.msra.mxu1 %v4391_v9  ;;  %v4502_v9 = vld [vmem:[#allocation8 + $0x628] sm:$0xf] }
 0x163   : > { %2615 = vmatpush.bf16.msra.mxu2 %v4583_v12  ;;  %v3931_v12 = vor.u32 %v5141_v5, %v3928_v6  ;;  %v5173_v5 = vld [vmem:[#allocation8 + $0x2ac] sm:$0xf]  ;;  %v4056_v6 = vld [vmem:[#allocation8 + $0x2b8] sm:$0xf0] }
 0x164   : > { %2628 = vmatpush.bf16.msra.mxu3 %v4711_v13 }
 0x166   : > { %2594 = vmatpush.bf16.msra.mxu0 %v4247_v20  ;;  %2607 = vmatpush.bf16.msra.mxu1 %v4375_v21  ;;  %v4503_v20 = vor.u32 %v5287_v10, %v4502_v9  ;;  %v4631_v21 = vor.u32 %v5319_v15, %v4630_v14  ;;  %v5089_v14 = vld [vmem:[#allocation8 + $0xc] sm:$0xf]  ;;  %v3720_v15 = vld [vmem:[#allocation8 + $0x18] sm:$0xf0] }
 0x167   : > { %2616 = vmatpush.bf16.msra.mxu2 %v4567_v25  ;;  %v3787_v25 = vor.u32 %v5105_v16, %v3784_v17  ;;  %v5121_v16 = vld [vmem:[#allocation8 + $0x10c] sm:$0xf]  ;;  %v4059_v17 = vor.u32 %v5173_v5, %v4056_v6 }
 0x168   : > { %2629 = vmatpush.bf16.msra.mxu3 %v4695_v26  ;;  %v3915_v26 = vor.u32 %v5137_v18, %v3912_v19  ;;  %v3848_v19 = vld [vmem:[#allocation8 + $0x118] sm:$0xf0]  ;;  %v5157_v6 = vld [vmem:[#allocation8 + $0x22c] sm:$0xf] }
 0x169   : > { %v6141_v29 = vpop.f32.mrf.mxu0 }
 0x16a   : > { %2595 = vmatpush.bf16.msra.mxu0 %v4231_v40  ;;  %2608 = vmatpush.bf16.msra.mxu1 %v4359_v41  ;;  %v6143_v13 = vpop.f32.mrf.mxu1  ;;  %v4487_v40 = vor.u32 %v5283_v23, %v4486_v22  ;;  %v4615_v41 = vor.u32 %v5315_v27, %v4614_v24  ;;  %v5201_v22 = vld [vmem:[#allocation8 + $0x38c] sm:$0xf]  ;;  %v4168_v23 = vld [vmem:[#allocation8 + $0x398] sm:$0xf0] }
 0x16b   : > { %2617 = vmatpush.bf16.msra.mxu2 %v4551_v42  ;;  %v5245_v24 = vld [vmem:[#allocation8 + $0x4ec] sm:$0xf]  ;;  %v4472_v27 = vld [vmem:[#allocation8 + $0x5f8] sm:$0xf0]  ;;  %v4171_v33 = vor.u32 %v5201_v22, %v4168_v23 }
 0x16c   : > { %2630 = vmatpush.bf16.msra.mxu3 %v4679_v43  ;;  %v3771_v43 = vor.u32 %v5101_v28, %v3768_v31  ;;  %v3723_v28 = vor.u32 %v5089_v14, %v3720_v15  ;;  %v3851_v31 = vor.u32 %v5121_v16, %v3848_v19  ;;  %v5189_v14 = vld [vmem:[#allocation8 + $0x32c] sm:$0xf]  ;;  %v4120_v15 = vld [vmem:[#allocation8 + $0x338] sm:$0xf0] }
 0x16d   : > { %2596 = vmatmul.bf16.vlgmr.msra.gmra.mxu0 %v6107_v30  ;;  %2609 = vmatmul.bf16.vlgmr.msra.gmra.mxu1 %v6109_v36  ;;  %v4296_v16 = vld [vmem:[#allocation8 + $0x498] sm:$0xf0]  ;;  %v4123_v19 = vor.u32 %v5189_v14, %v4120_v15  ;;  %v5153_v22 = vld [vmem:[#allocation8 + $0x20c] sm:$0xf] }
 0x16e   : > { %2640 = vmatpush.bf16.msrb.mxu0 %v3835_v50  ;;  %2653 = vmatpush.bf16.msrb.mxu1 %v3963_v51  ;;  %v5097_v50 = vld [vmem:[#allocation8 + $0x4c] sm:$0xf]  ;;  %v3752_v51 = vld [vmem:[#allocation8 + $0x58] sm:$0xf0] }
 0x16f   : > { %2618 = vmatpush.bf16.msra.mxu2 %v4535_v58  ;;  %v5209_v58 = vld [vmem:[#allocation8 + $0x3cc] sm:$0xf]  ;;  %v3755_v61 = vor.u32 %v5097_v50, %v3752_v51  ;;  %v4328_v50 = vld [vmem:[#allocation8 + $0x4d8] sm:$0xf0] }
 0x170   : > { %2631 = vmatpush.bf16.msra.mxu3 %v4663_v59  ;;  %v4200_v59 = vld [vmem:[#allocation8 + $0x3d8] sm:$0xf0]  ;;  %v5273_v51 = vld [vmem:[#allocation8 + $0x5cc] sm:$0xf] }
 0x171   : > { %v2339_v42 = vpop.f32.mrf.mxu0  ;;  %v4203_v2 = vor.u32 %v5209_v58, %v4200_v59  ;;  %v3976_v23 = vld [vmem:[#allocation8 + $0x218] sm:$0xf0]  ;;  %v5301_v14 = vld [vmem:[#allocation8 + $0x6ac] sm:$0xf] }
 0x172   : > { %2641 = vmatpush.bf16.msrb.mxu0 %v3819_v63  ;;  %2654 = vmatpush.bf16.msrb.mxu1 %v3947_v0  ;;  %v2352_v46 = vpop.f32.mrf.mxu1  ;;  %v5093_v63 = vld [vmem:[#allocation8 + $0x2c] sm:$0xf]  ;;  %v3736_v0 = vld [vmem:[#allocation8 + $0x38] sm:$0xf0] }
 0x173   : > { %2619 = vmatpush.bf16.msra.mxu2 %v4519_v7  ;;  %v5205_v7 = vld [vmem:[#allocation8 + $0x3ac] sm:$0xf]  ;;  %v3739_v10 = vor.u32 %v5093_v63, %v3736_v0  ;;  %v4312_v0 = vld [vmem:[#allocation8 + $0x4b8] sm:$0xf0] }
 0x174   : > { %2632 = vmatpush.bf16.msra.mxu3 %v4647_v8  ;;  %v4184_v8 = vld [vmem:[#allocation8 + $0x3b8] sm:$0xf0]  ;;  %v5197_v42 = vld [vmem:[#allocation8 + $0x36c] sm:$0xf] }
 0x175   : > { %v4187_v18 = vor.u32 %v5205_v7, %v4184_v8  ;;  %v5237_v63 = vld [vmem:[#allocation8 + $0x4ac] sm:$0xf]  ;;  %v3992_v7 = vld [vmem:[#allocation8 + $0x238] sm:$0xf0] }
 0x176   : > { %2642 = vmatpush.bf16.msrb.mxu0 %v3803_v11  ;;  %2655 = vmatpush.bf16.msrb.mxu1 %v3931_v12  ;;  %v3867_v11 = vor.u32 %v5125_v3, %v3864_v4  ;;  %v4011_v3 = vor.u32 %v5161_v56, %v4008_v57  ;;  %v4315_v8 = vor.u32 %v5237_v63, %v4312_v0  ;;  %v5257_v57 = vld [vmem:[#allocation8 + $0x54c] sm:$0xf]  ;;  %v4712_v63 = vld [vmem:[#allocation8 + $0x7d8] sm:$0xf0] }
 0x177   : > { %2620 = vmatpush.bf16.msra.mxu2 %v4503_v20  ;;  %v5169_v20 = vld [vmem:[#allocation8 + $0x28c] sm:$0xf]  ;;  %v4568_v15 = vld [vmem:[#allocation8 + $0x6b8] sm:$0xf0] }
 0x178   : > { %2633 = vmatpush.bf16.msra.mxu3 %v4631_v21  ;;  %v4040_v21 = vld [vmem:[#allocation8 + $0x298] sm:$0xf0] }
 0x179   : > { %v6147_v9 = vpop.f32.mrf.mxu0  ;;  %v4043_v32 = vor.u32 %v5169_v20, %v4040_v21 }
 0x17a   : > { %2643 = vmatpush.bf16.msrb.mxu0 %v3787_v25  ;;  %2656 = vmatpush.bf16.msrb.mxu1 %v3915_v26  ;;  %v6149_v12 = vpop.f32.mrf.mxu1  ;;  %v4344_v25 = vld [vmem:[#allocation8 + $0x4f8] sm:$0xf0]  ;;  %v5277_v26 = vld [vmem:[#allocation8 + $0x5ec] sm:$0xf] }
 0x17b   : > { %2621 = vmatpush.bf16.msra.mxu2 %v4487_v40  ;;  %v4347_v38 = vor.u32 %v5245_v24, %v4344_v25  ;;  %v4475_v40 = vor.u32 %v5277_v26, %v4472_v27  ;;  %v5185_v24 = vld [vmem:[#allocation8 + $0x30c] sm:$0xf]  ;;  %v4104_v27 = vld [vmem:[#allocation8 + $0x318] sm:$0xf0] }
 0x17c   : > { %2634 = vmatpush.bf16.msra.mxu3 %v4615_v41 }
 0x17e   : > { %2644 = vmatpush.bf16.msrb.mxu0 %v3771_v43  ;;  %2657 = vmatpush.bf16.msrb.mxu1 %v3899_v45  ;;  %v4152_v43 = vld [vmem:[#allocation8 + $0x378] sm:$0xf0]  ;;  %v5241_v45 = vld [vmem:[#allocation8 + $0x4cc] sm:$0xf] }
 0x17f   : > { %2666 = vmatpush.bf16.msrb.mxu2 %v4091_v52  ;;  %2635 = vmatmul.bf16.vlgmr.msra.gmra.mxu3 %v6123_v49  ;;  %v6151_v34 = vpop.f32.mrf.mxu2  ;;  %v4456_v52 = vld [vmem:[#allocation8 + $0x5d8] sm:$0xf0]  ;;  %v4155_v55 = vor.u32 %v5197_v42, %v4152_v43  ;;  %v4331_v58 = vor.u32 %v5241_v45, %v4328_v50  ;;  %v3979_v42 = vor.u32 %v5153_v22, %v3976_v23  ;;  %v6161_v45 = vld [vmem:[#allocation10] sm:$0xf]  ;;  %v5217_v22 = vld [vmem:[#allocation8 + $0x40c] sm:$0xf] }
 0x180   : > { %2679 = vmatpush.bf16.msrb.mxu3 %v4219_v53  ;;  %2622 = vmatmul.bf16.vlgmr.msra.gmra.mxu2 %v6121_v47  ;;  %v6153_v41 = vpop.f32.mrf.mxu3  ;;  %v4459_v59 = vor.u32 %v5273_v51, %v4456_v52  ;;  %v4107_v43 = vor.u32 %v5185_v24, %v4104_v27  ;;  %v4232_v23 = vld [vmem:[#allocation8 + $0x418] sm:$0xf0]  ;;  %v5249_v24 = vld [vmem:[#allocation8 + $0x50c] sm:$0xf] }
 0x181   : > { %v2391_v46 = vpop.f32.mrf.mxu0  ;;  %v4360_v27 = vld [vmem:[#allocation8 + $0x518] sm:$0xf0] }
 0x182   : > { %2645 = vmatpush.bf16.msrb.mxu0 %v3755_v61  ;;  %2658 = vmatpush.bf16.msrb.mxu1 %v3883_v62  ;;  %v2404_v53 = vpop.f32.mrf.mxu1  ;;  %v5193_v61 = vld [vmem:[#allocation8 + $0x34c] sm:$0xf]  ;;  %v4136_v62 = vld [vmem:[#allocation8 + $0x358] sm:$0xf0] }
 0x183   : > { %2667 = vmatpush.bf16.msrb.mxu2 %v4075_v1  ;;  %v5269_v1 = vld [vmem:[#allocation8 + $0x5ac] sm:$0xf]  ;;  %v4139_v4 = vor.u32 %v5193_v61, %v4136_v62  ;;  %v4584_v61 = vld [vmem:[#allocation8 + $0x6d8] sm:$0xf0] }
 0x184   : > { %2680 = vmatpush.bf16.msrb.mxu3 %v4203_v2  ;;  %v4440_v2 = vld [vmem:[#allocation8 + $0x5b8] sm:$0xf0]  ;;  %v5225_v53 = vld [vmem:[#allocation8 + $0x44c] sm:$0xf] }
 0x185   : > { %v5337_v62 = vld [vmem:[#allocation8 + $0x7cc] sm:$0xf] }
 0x186   : > { %2646 = vmatpush.bf16.msrb.mxu0 %v3739_v10  ;;  %2659 = vmatpush.bf16.msrb.mxu1 %v3867_v11  ;;  %v4443_v10 = vor.u32 %v5269_v1, %v4440_v2  ;;  %v1040_v2 = vperm.slane %v6161_v45, 0 }
 0x187   : > { %2668 = vmatpush.bf16.msrb.mxu2 %v4059_v17  ;;  %v2365_v5 = vpop.f32.mrf.mxu2  ;;  %v4424_v17 = vld [vmem:[#allocation8 + $0x598] sm:$0xf0] }
 0x188   : > { %2681 = vmatpush.bf16.msrb.mxu3 %v4187_v18  ;;  %v2378_v11 = vpop.f32.mrf.mxu3  ;;  %v3995_v18 = vor.u32 %v5157_v6, %v3992_v7  ;;  %v5221_v5 = vld [vmem:[#allocation8 + $0x42c] sm:$0xf]  ;;  %v4248_v6 = vld [vmem:[#allocation8 + $0x438] sm:$0xf0] }
 0x189   : > { %v4376_v11 = vld [vmem:[#allocation8 + $0x538] sm:$0xf0] }
 0x18a   : > { %2647 = vmatpush.bf16.msrb.mxu0 %v3723_v28  ;;  %2660 = vmatpush.bf16.msrb.mxu1 %v3851_v31  ;;  %v6157_v20 = vpop.f32.mrf.mxu0  ;;  %v5229_v28 = vld [vmem:[#allocation8 + $0x46c] sm:$0xf]  ;;  %v4280_v31 = vld [vmem:[#allocation8 + $0x478] sm:$0xf0] }
 0x18b   : > { %2669 = vmatpush.bf16.msrb.mxu2 %v4043_v32  ;;  %v5261_v32 = vld [vmem:[#allocation8 + $0x56c] sm:$0xf]  ;;  %v4283_v46 = vor.u32 %v5229_v28, %v4280_v31  ;;  %v4552_v28 = vld [vmem:[#allocation8 + $0x698] sm:$0xf0] }
 0x18c   : > { %2682 = vmatpush.bf16.msrb.mxu3 %v4171_v33  ;;  %v6159_v21 = vpop.f32.mrf.mxu1  ;;  %v4408_v33 = vld [vmem:[#allocation8 + $0x578] sm:$0xf0]  ;;  %v5329_v31 = vld [vmem:[#allocation8 + $0x78c] sm:$0xf] }
 0x18d   : > { %2648 = vmatmul.bf16.vlgmr.msrb.gmra.mxu0 %v6099_v48  ;;  %2661 = vmatmul.bf16.vlgmr.msrb.gmra.mxu1 %v6101_v60  ;;  %v5233_v48 = vld [vmem:[#allocation8 + $0x48c] sm:$0xf]  ;;  %v4411_v50 = vor.u32 %v5261_v32, %v4408_v33  ;;  %v4680_v32 = vld [vmem:[#allocation8 + $0x798] sm:$0xf0]  ;;  %v4790_v33 = vld [vmem:[#allocation11 + $0x70] sm:$0xf] }
 0x18e   : > { %2692 = vmatpush.bf16.msra.mxu0 %v4347_v38  ;;  %2705 = vmatpush.bf16.msra.mxu1 %v4475_v40  ;;  %v5265_v60 = vld [vmem:[#allocation8 + $0x58c] sm:$0xf]  ;;  %v4299_v25 = vor.u32 %v5233_v48, %v4296_v16  ;;  %v4728_v40 = vld [vmem:[#allocation8 + $0x7f8] sm:$0xf0] }
 0x18f   : > { %2670 = vmatpush.bf16.msrb.mxu2 %v4027_v54  ;;  %v4427_v26 = vor.u32 %v5265_v60, %v4424_v17  ;;  %v5341_v38 = vld [vmem:[#allocation8 + $0x7ec] sm:$0xf]  ;;  %v6163_v51 = vpop.f32.mrf.mxu2  ;;  %v4264_v54 = vld [vmem:[#allocation8 + $0x458] sm:$0xf0]  ;;  %v4251_v60 = vor.u32 %v5221_v5, %v4248_v6 }
 0x190   : > { %2683 = vmatpush.bf16.msrb.mxu3 %v4155_v55  ;;  %v6165_v52 = vpop.f32.mrf.mxu3  ;;  %v4603_v55 = vor.u32 %v5309_v35, %v4600_v37  ;;  %v4731_v56 = vor.u32 %v5341_v38, %v4728_v40  ;;  %v5333_v48 = vld [vmem:[#allocation8 + $0x7ac] sm:$0xf]  ;;  %v4696_v16 = vld [vmem:[#allocation8 + $0x7b8] sm:$0xf0]  ;;  %v4854_v37 = vld [vmem:[#allocation11 + $0xf0] sm:$0xf]  ;;  %v4235_v40 = vor.u32 %v5217_v22, %v4232_v23 }
 0x191   : > { %v5359_v35 = vld [vmem:[#allocation11 + $0x74] sm:$0xf0]  ;;  %v5321_v6 = vld [vmem:[#allocation8 + $0x74c] sm:$0xf] }
 0x192   : > { %2693 = vmatpush.bf16.msra.mxu0 %v4331_v58  ;;  %2706 = vmatpush.bf16.msra.mxu1 %v4459_v59  ;;  %v4392_v58 = vld [vmem:[#allocation8 + $0x558] sm:$0xf0]  ;;  %v5305_v59 = vld [vmem:[#allocation8 + $0x6cc] sm:$0xf]  ;;  %v2443_v0 = vpop.f32.mrf.mxu0 }
 0x193   : > { %2671 = vmatpush.bf16.msrb.mxu2 %v4011_v3  ;;  %v4267_v3 = vor.u32 %v5225_v53, %v4264_v54  ;;  %v4587_v7 = vor.u32 %v5305_v59, %v4584_v61  ;;  %v5375_v38 = vld [vmem:[#allocation11 + $0xf4] sm:$0xf0]  ;;  %v5357_v59 = vld [vmem:[#allocation11 + $0x64] sm:$0xf0]  ;;  %v4846_v61 = vld [vmem:[#allocation11 + $0xe0] sm:$0xf] }
 0x194   : > { %2684 = vmatpush.bf16.msrb.mxu3 %v4139_v4  ;;  %v2456_v1 = vpop.f32.mrf.mxu1  ;;  %v4395_v4 = vor.u32 %v5257_v57, %v4392_v58  ;;  %v4536_v53 = vld [vmem:[#allocation8 + $0x678] sm:$0xf0]  ;;  %v4855_v57 = vor.u32 %v5375_v38, %v4854_v37  ;;  %v4782_v58 = vld [vmem:[#allocation11 + $0x60] sm:$0xf]  ;;  %v5313_v38 = vld [vmem:[#allocation8 + $0x70c] sm:$0xf] }
 0x195   : > { %v4783_v5 = vor.u32 %v5357_v59, %v4782_v58  ;;  %v4632_v22 = vld [vmem:[#allocation8 + $0x738] sm:$0xf0]  ;;  %v4750_v59 = vld [vmem:[#allocation11 + $0x20] sm:$0xf] }
 0x196   : > { %2694 = vmatpush.bf16.msra.mxu0 %v4315_v8  ;;  %2707 = vmatpush.bf16.msra.mxu1 %v4443_v10  ;;  %v4715_v8 = vor.u32 %v5337_v62, %v4712_v63  ;;  %v5253_v10 = vld [vmem:[#allocation8 + $0x52c] sm:$0xf] }
 0x197   : > { %2672 = vmatpush.bf16.msrb.mxu2 %v3995_v18  ;;  %v4379_v17 = vor.u32 %v5253_v10, %v4376_v11  ;;  %v2417_v18 = vpop.f32.mrf.mxu2  ;;  %v5373_v62 = vld [vmem:[#allocation11 + $0xe4] sm:$0xf0]  ;;  %v4774_v10 = vld [vmem:[#allocation11 + $0x50] sm:$0xf] }
 0x198   : > { %2685 = vmatpush.bf16.msrb.mxu3 %v4123_v19  ;;  %v2430_v19 = vpop.f32.mrf.mxu3  ;;  %v4838_v11 = vld [vmem:[#allocation11 + $0xd0] sm:$0xf] }
 0x199   : > { %v5317_v19 = vld [vmem:[#allocation8 + $0x72c] sm:$0xf] }
 0x19a   : > { %2695 = vmatpush.bf16.msra.mxu0 %v4299_v25  ;;  %2708 = vmatpush.bf16.msra.mxu1 %v4427_v26  ;;  %v4571_v25 = vor.u32 %v5301_v14, %v4568_v15  ;;  %v4699_v26 = vor.u32 %v5333_v48, %v4696_v16  ;;  %v5371_v14 = vld [vmem:[#allocation11 + $0xd4] sm:$0xf0] }
 0x19b   : > { %2673 = vmatpush.bf16.msrb.mxu2 %v3979_v42  ;;  %v4363_v42 = vor.u32 %v5249_v24, %v4360_v27  ;;  %v4839_v23 = vor.u32 %v5371_v14, %v4838_v11  ;;  %v5353_v24 = vld [vmem:[#allocation11 + $0x44] sm:$0xf0]  ;;  %v5358_v11 = vld [vmem:[#allocation11 + $0x74] sm:$0xf]  ;;  %v4798_v14 = vld [vmem:[#allocation11 + $0x80] sm:$0xf] }
 0x19c   : > { %2686 = vmatpush.bf16.msrb.mxu3 %v4107_v43 }
 0x19e   : > { %2696 = vmatpush.bf16.msra.mxu0 %v4283_v46  ;;  %2709 = vmatpush.bf16.msra.mxu1 %v4411_v50  ;;  %v4683_v46 = vor.u32 %v5329_v31, %v4680_v32  ;;  %v5293_v50 = vld [vmem:[#allocation8 + $0x66c] sm:$0xf] }
 0x19f   : > { %2718 = vmatpush.bf16.msra.mxu2 %v4603_v55  ;;  %2687 = vmatmul.bf16.vlgmr.msrb.gmra.mxu3 %v6113_v44  ;;  %v2338_v44 = vadd.f32 %v6141_v29, %v1040_v2  ;;  %v4791_v55 = vor.u32 %v5359_v35, %v4790_v33  ;;  %v5325_v29 = vld [vmem:[#allocation8 + $0x76c] sm:$0xf]  ;;  %v4539_v0 = vor.u32 %v5293_v50, %v4536_v53  ;;  %v4488_v35 = vld [vmem:[#allocation8 + $0x618] sm:$0xf0] }
 0x1a0   : > { %2731 = vmatpush.bf16.msra.mxu3 %v4731_v56  ;;  %2674 = vmatmul.bf16.vlgmr.msrb.gmra.mxu2 %v6111_v39  ;;  %v5297_v39 = vld [vmem:[#allocation8 + $0x68c] sm:$0xf]  ;;  %v4664_v56 = vld [vmem:[#allocation8 + $0x778] sm:$0xf0] }
 0x1a1   : > { %v4555_v43 = vor.u32 %v5297_v39, %v4552_v28  ;;  %v2351_v54 = vadd.f32 %v6143_v13, %v2338_v44  ;;  %v4667_v1 = vor.u32 %v5325_v29, %v4664_v56  ;;  %v5289_v13 = vld [vmem:[#allocation8 + $0x64c] sm:$0xf]  ;;  %v1041_v39 = vperm.slane %v6161_v45, 1  ;;  %v5367_v50 = vld [vmem:[#allocation11 + $0xb4] sm:$0xf0] }
 0x1a2   : > { %2697 = vmatpush.bf16.msra.mxu0 %v4267_v3  ;;  %2710 = vmatpush.bf16.msra.mxu1 %v4395_v4  ;;  %v6175_v3 = vpop.f32.mrf.mxu3  ;;  %v4520_v4 = vld [vmem:[#allocation8 + $0x658] sm:$0xf0]  ;;  %v4635_v44 = vor.u32 %v5317_v19, %v4632_v22  ;;  %v5281_v33 = vld [vmem:[#allocation8 + $0x60c] sm:$0xf]  ;;  %v5356_v22 = vld [vmem:[#allocation11 + $0x64] sm:$0xf] }
 0x1a3   : > { %2719 = vmatpush.bf16.msra.mxu2 %v4587_v7  ;;  %v2364_v63 = vadd.f32 %v6151_v34, %v2351_v54  ;;  %v6173_v2 = vpop.f32.mrf.mxu2  ;;  %v4648_v7 = vld [vmem:[#allocation8 + $0x758] sm:$0xf0]  ;;  %v4523_v48 = vor.u32 %v5289_v13, %v4520_v4  ;;  %v2442_v54 = vadd.f32 %v6157_v20, %v1041_v39  ;;  %v4742_v4 = vld [vmem:[#allocation11 + $0x10] sm:$0xf] }
 0x1a4   : > { %2732 = vmatpush.bf16.msra.mxu3 %v4715_v8  ;;  %v4847_v8 = vor.u32 %v5373_v62, %v4846_v61  ;;  %v5355_v34 = vld [vmem:[#allocation11 + $0x54] sm:$0xf0]  ;;  %v4651_v16 = vor.u32 %v5321_v6, %v4648_v7  ;;  %v5349_v61 = vld [vmem:[#allocation11 + $0x24] sm:$0xf0]  ;;  %v4814_v62 = vld [vmem:[#allocation11 + $0xa0] sm:$0xf] }
 0x1a5   : > { %v2377_v15 = vadd.f32 %v6153_v41, %v2364_v63  ;;  %v4775_v18 = vor.u32 %v5355_v34, %v4774_v10  ;;  %v5365_v63 = vld [vmem:[#allocation11 + $0xa4] sm:$0xf0]  ;;  %v4751_v13 = vor.u32 %v5349_v61, %v4750_v59  ;;  %v4806_v6 = vld [vmem:[#allocation11 + $0x90] sm:$0xf]  ;;  %v5363_v7 = vld [vmem:[#allocation11 + $0x94] sm:$0xf0] }
 0x1a6   : > { %2698 = vmatpush.bf16.msra.mxu0 %v4251_v60  ;;  %2711 = vmatpush.bf16.msra.mxu1 %v4379_v17  ;;  %v5285_v60 = vld [vmem:[#allocation8 + $0x62c] sm:$0xf]  ;;  %v4504_v17 = vld [vmem:[#allocation8 + $0x638] sm:$0xf0]  ;;  %v4807_v10 = vor.u32 %v5363_v7, %v4806_v6 }
 0x1a7   : > { %2720 = vmatpush.bf16.msra.mxu2 %v4571_v25  ;;  %v5369_v25 = vld [vmem:[#allocation11 + $0xc4] sm:$0xf0]  ;;  %v4507_v28 = vor.u32 %v5285_v60, %v4504_v17  ;;  %v5374_v60 = vld [vmem:[#allocation11 + $0xf4] sm:$0xf]  ;;  %v4856_v17 = vld [vmem:[#allocation11 + $0xf8] sm:$0xf0] }
 0x1a8   : > { %2733 = vmatpush.bf16.msra.mxu3 %v4699_v26  ;;  %v2390_v26 = vadd.f32 %v6147_v9, %v2377_v15  ;;  %v5345_v34 = vld [vmem:[#allocation11 + $0x4] sm:$0xf0]  ;;  %v4859_v19 = vor.u32 %v5374_v60, %v4856_v17  ;;  %v4878_v60 = vld [vmem:[#allocation11 + $0x120] sm:$0xf] }
 0x1a9   : > { %v5361_v15 = vld [vmem:[#allocation11 + $0x84] sm:$0xf0] }
 0x1aa   : > { %2699 = vmatpush.bf16.msra.mxu0 %v4235_v40  ;;  %2712 = vmatpush.bf16.msra.mxu1 %v4363_v42  ;;  %v6181_v27 = vpop.f32.mrf.mxu0  ;;  %v6183_v41 = vpop.f32.mrf.mxu1  ;;  %v4616_v40 = vld [vmem:[#allocation8 + $0x718] sm:$0xf0]  ;;  %v4758_v42 = vld [vmem:[#allocation11 + $0x30] sm:$0xf]  ;;  %v2403_v53 = vadd.f32 %v6149_v12, %v2390_v26  ;;  %v2455_v12 = vadd.f32 %v6159_v21, %v2442_v54  ;;  %v4768_v54 = vld [vmem:[#allocation11 + $0x48] sm:$0xf0] }
 0x1ab   : > { %2721 = vmatpush.bf16.msra.mxu2 %v4555_v43  ;;  %v2469_v31 = vpop.f32.mrf.mxu2  ;;  %v2482_v32 = vpop.f32.mrf.mxu3  ;;  %v5351_v43 = vld [vmem:[#allocation11 + $0x34] sm:$0xf0]  ;;  %v4619_v29 = vor.u32 %v5313_v38, %v4616_v40  ;;  %v4840_v40 = vld [vmem:[#allocation11 + $0xd8] sm:$0xf0]  ;;  %v5381_v17 = vld [vmem:[#allocation11 + $0x124] sm:$0xf0] }
 0x1ac   : > { %2734 = vmatpush.bf16.msra.mxu3 %v4683_v46  ;;  %v4822_v46 = vld [vmem:[#allocation11 + $0xb0] sm:$0xf]  ;;  %v2416_v56 = vadd.f32 %v6163_v51, %v2403_v53  ;;  %v4815_v51 = vor.u32 %v5365_v63, %v4814_v62  ;;  %v5391_v26 = vld [vmem:[#allocation11 + $0x174] sm:$0xf0]  ;;  %v5352_v53 = vld [vmem:[#allocation11 + $0x44] sm:$0xf] }
 0x1ad   : > { %2700 = vmatmul.bf16.vlgmr.msra.gmra.mxu0 %v6107_v30  ;;  %2713 = vmatmul.bf16.vlgmr.msra.gmra.mxu1 %v6109_v36  ;;  %v4766_v30 = vld [vmem:[#allocation11 + $0x40] sm:$0xf]  ;;  %v4823_v58 = vor.u32 %v5367_v50, %v4822_v46 }
 0x1ae   : > { %3142 = vmatpush.bf16.msrb.mxu0 %v4791_v55  ;;  %3155 = vmatpush.bf16.msrb.mxu1 %v4855_v57  ;;  %v4830_v36 = vld [vmem:[#allocation11 + $0xc0] sm:$0xf]  ;;  %v4767_v37 = vor.u32 %v5353_v24, %v4766_v30  ;;  %v4491_v55 = vor.u32 %v5281_v33, %v4488_v35  ;;  %v4759_v57 = vor.u32 %v5351_v43, %v4758_v42  ;;  %v5372_v30 = vld [vmem:[#allocation11 + $0xe4] sm:$0xf]  ;;  %v5354_v33 = vld [vmem:[#allocation11 + $0x54] sm:$0xf] }
 0x1af   : > { %2722 = vmatpush.bf16.msra.mxu2 %v4539_v0  ;;  %v4831_v9 = vor.u32 %v5369_v25, %v4830_v36  ;;  %v2429_v20 = vadd.f32 %v6165_v52, %v2416_v56  ;;  %v4734_v52 = vld [vmem:[#allocation11] sm:$0xf]  ;;  %v4848_v36 = vld [vmem:[#allocation11 + $0xe8] sm:$0xf0]  ;;  %v4918_v25 = vld [vmem:[#allocation11 + $0x170] sm:$0xf] }
 0x1b0   : > { %2735 = vmatpush.bf16.msra.mxu3 %v4667_v1  ;;  %v4919_v39 = vor.u32 %v5391_v26, %v4918_v25  ;;  %v4851_v32 = vor.u32 %v5372_v30, %v4848_v36  ;;  %v4776_v35 = vld [vmem:[#allocation11 + $0x58] sm:$0xf0]  ;;  %v5389_v42 = vld [vmem:[#allocation11 + $0x164] sm:$0xf0]  ;;  %v4902_v56 = vld [vmem:[#allocation11 + $0x150] sm:$0xf] }
 0x1b1   : > { %5556 = vtanh.f32 %v2429_v20  ;;  %v4779_v46 = vor.u32 %v5354_v33, %v4776_v35  ;;  %v4894_v20 = vld [vmem:[#allocation11 + $0x140] sm:$0xf]  ;;  %v4808_v30 = vld [vmem:[#allocation11 + $0x98] sm:$0xf0]  ;;  %v4870_v36 = vld [vmem:[#allocation11 + $0x110] sm:$0xf] }
 0x1b2   : > { %3143 = vmatpush.bf16.msrb.mxu0 %v4783_v5  ;;  %3156 = vmatpush.bf16.msrb.mxu1 %v4847_v8  ;;  %v2495_v0 = vpop.f32.mrf.mxu0  ;;  %v2508_v1 = vpop.f32.mrf.mxu1  ;;  %v5347_v5 = vld [vmem:[#allocation11 + $0x14] sm:$0xf0]  ;;  %v2468_v8 = vadd.f32 %v6173_v2, %v2455_v12  ;;  %v5350_v12 = vld [vmem:[#allocation11 + $0x34] sm:$0xf]  ;;  %v4862_v33 = vld [vmem:[#allocation11 + $0x100] sm:$0xf] }
 0x1b3   : > { %2723 = vmatpush.bf16.msra.mxu2 %v4523_v48  ;;  %v4743_v21 = vor.u32 %v5347_v5, %v4742_v4  ;;  %v4771_v0 = vor.u32 %v5352_v53, %v4768_v54  ;;  %v5366_v4 = vld [vmem:[#allocation11 + $0xb4] sm:$0xf]  ;;  %v4824_v5 = vld [vmem:[#allocation11 + $0xb8] sm:$0xf0]  ;;  %v5379_v25 = vld [vmem:[#allocation11 + $0x114] sm:$0xf0] }
 0x1b4   : > { %2736 = vmatpush.bf16.msra.mxu3 %v4651_v16  ;;  %v2481_v48 = vadd.f32 %v6175_v3, %v2468_v8  ;;  %v4792_v16 = vld [vmem:[#allocation11 + $0x78] sm:$0xf0]  ;;  %v5377_v35 = vld [vmem:[#allocation11 + $0x104] sm:$0xf0]  ;;  %v4912_v53 = vld [vmem:[#allocation11 + $0x168] sm:$0xf0] }
 0x1b6   : > { %3144 = vmatpush.bf16.msrb.mxu0 %v4775_v18  ;;  %3157 = vmatpush.bf16.msrb.mxu1 %v4839_v23  ;;  %v2494_v2 = vadd.f32 %v6181_v27, %v2481_v48  ;;  %v4795_v18 = vor.u32 %v5358_v11, %v4792_v16  ;;  %v4784_v23 = vld [vmem:[#allocation11 + $0x68] sm:$0xf0]  ;;  %v5364_v11 = vld [vmem:[#allocation11 + $0xa4] sm:$0xf]  ;;  %v5383_v48 = vld [vmem:[#allocation11 + $0x134] sm:$0xf0] }
 0x1b7   : > { %2724 = vmatpush.bf16.msra.mxu2 %v4507_v28  ;;  %v5557_v24 = vpop.eup %5556  ;;  %v4787_v31 = vor.u32 %v5356_v22, %v4784_v23  ;;  %v4744_v22 = vld [vmem:[#allocation11 + $0x18] sm:$0xf0]  ;;  %v5362_v23 = vld [vmem:[#allocation11 + $0x94] sm:$0xf] }
 0x1b8   : > { %2737 = vmatpush.bf16.msra.mxu3 %v4635_v44  ;;  %v2507_v3 = vadd.f32 %v6183_v41, %v2494_v2  ;;  %v6197_v28 = vpack.c.bf16 %v5557_v24, %v5557_v24  ;;  %v4879_v24 = vor.u32 %v5381_v17, %v4878_v60  ;;  %v5376_v60 = vld [vmem:[#allocation11 + $0x104] sm:$0xf] }
 0x1ba   : > { %3145 = vmatpush.bf16.msrb.mxu0 %v4767_v37  ;;  %3158 = vmatpush.bf16.msrb.mxu1 %v4831_v9  ;;  %v5370_v37 = vld [vmem:[#allocation11 + $0xd4] sm:$0xf]  ;;  %v4910_v9 = vld [vmem:[#allocation11 + $0x160] sm:$0xf] }
 0x1bb   : > { %2725 = vmatpush.bf16.msra.mxu2 %v4491_v55  ;;  %v4911_v41 = vor.u32 %v5389_v42, %v4910_v9  ;;  %v4843_v50 = vor.u32 %v5370_v37, %v4840_v40  ;;  %v5368_v55 = vld [vmem:[#allocation11 + $0xc4] sm:$0xf]  ;;  %v5390_v37 = vld [vmem:[#allocation11 + $0x174] sm:$0xf]  ;;  %v4863_v42 = vor.u32 %v5377_v35, %v4862_v33 }
 0x1bc   : > { %2738 = vmatpush.bf16.msra.mxu3 %v4619_v29  ;;  %v4832_v29 = vld [vmem:[#allocation11 + $0xc8] sm:$0xf0] }
 0x1bd   : > { %v4835_v1 = vor.u32 %v5368_v55, %v4832_v29  ;;  %v5386_v55 = vld [vmem:[#allocation11 + $0x154] sm:$0xf]  ;;  %v4904_v29 = vld [vmem:[#allocation11 + $0x158] sm:$0xf0] }
 0x1be   : > { %3146 = vmatpush.bf16.msrb.mxu0 %v4759_v57  ;;  %3159 = vmatpush.bf16.msrb.mxu1 %v4823_v58  ;;  %v5387_v57 = vld [vmem:[#allocation11 + $0x154] sm:$0xf0] }
 0x1bf   : > { %2726 = vmatmul.bf16.vlgmr.msra.gmra.mxu2 %v6121_v47  ;;  %2739 = vmatmul.bf16.vlgmr.msra.gmra.mxu3 %v6123_v49  ;;  %v4735_v47 = vor.u32 %v5345_v34, %v4734_v52  ;;  %v4799_v49 = vor.u32 %v5361_v15, %v4798_v14  ;;  %v4903_v58 = vor.u32 %v5387_v57, %v4902_v56  ;;  %v5348_v52 = vld [vmem:[#allocation11 + $0x24] sm:$0xf]  ;;  %v4752_v34 = vld [vmem:[#allocation11 + $0x28] sm:$0xf0]  ;;  %v4886_v15 = vld [vmem:[#allocation11 + $0x130] sm:$0xf] }
 0x1c0   : > { %3168 = vmatpush.bf16.msrb.mxu2 %v4919_v39  ;;  %v4816_v14 = vld [vmem:[#allocation11 + $0xa8] sm:$0xf0]  ;;  %v4887_v16 = vor.u32 %v5383_v48, %v4886_v15  ;;  %v4811_v39 = vor.u32 %v5362_v23, %v4808_v30  ;;  %v4907_v56 = vor.u32 %v5386_v55, %v4904_v29  ;;  %v4872_v15 = vld [vmem:[#allocation11 + $0x118] sm:$0xf0]  ;;  %v4926_v29 = vld [vmem:[#allocation11 + $0x180] sm:$0xf] }
 0x1c2   : > { %3147 = vmatpush.bf16.msrb.mxu0 %v4751_v13  ;;  %3160 = vmatpush.bf16.msrb.mxu1 %v4815_v51  ;;  %v2532_v44 = vpop.f32.mrf.mxu3  ;;  %v5385_v13 = vld [vmem:[#allocation11 + $0x144] sm:$0xf0]  ;;  %v4760_v51 = vld [vmem:[#allocation11 + $0x38] sm:$0xf0] }
 0x1c3   : > { %v2519_v27 = vpop.f32.mrf.mxu2  ;;  %v4895_v6 = vor.u32 %v5385_v13, %v4894_v20  ;;  %v5382_v13 = vld [vmem:[#allocation11 + $0x134] sm:$0xf] }
 0x1c4   : > { %v2520_v38 = vadd.f32 %v2519_v27, %v2507_v3  ;;  %3169 = vmatpush.bf16.msrb.mxu2 %v4911_v41  ;;  %v5344_v3 = vld [vmem:[#allocation11 + $0x4] sm:$0xf]  ;;  %v4736_v27 = vld [vmem:[#allocation11 + $0x8] sm:$0xf0] }
 0x1c5   : > { %v4739_v40 = vor.u32 %v5344_v3, %v4736_v27  ;;  %v4958_v27 = vld [vmem:[#allocation11 + $0x1c0] sm:$0xf] }
 0x1c6   : > { %3148 = vmatpush.bf16.msrb.mxu0 %v4743_v21  ;;  %3161 = vmatpush.bf16.msrb.mxu1 %v4807_v10  ;;  %v2533_v43 = vadd.f32 %v2532_v44, %v2520_v38  ;;  %v4763_v21 = vor.u32 %v5350_v12, %v4760_v51  ;;  %v4827_v10 = vor.u32 %v5366_v4, %v4824_v5  ;;  %v5360_v44 = vld [vmem:[#allocation11 + $0x84] sm:$0xf]  ;;  %v4920_v38 = vld [vmem:[#allocation11 + $0x178] sm:$0xf0]  ;;  %v1042_v12 = vperm.slane %v6161_v45, 2 }
 0x1c7   : > { %v4923_v41 = vor.u32 %v5390_v37, %v4920_v38  ;;  %v4888_v51 = vld [vmem:[#allocation11 + $0x138] sm:$0xf0]  ;;  %v5380_v5 = vld [vmem:[#allocation11 + $0x124] sm:$0xf]  ;;  %v4950_v37 = vld [vmem:[#allocation11 + $0x1b0] sm:$0xf] }
 0x1c8   : > { %5558 = vtanh.f32 %v2533_v43  ;;  %3170 = vmatpush.bf16.msrb.mxu2 %v4903_v58  ;;  %v4891_v4 = vor.u32 %v5382_v13, %v4888_v51  ;;  %v5399_v38 = vld [vmem:[#allocation11 + $0x1b4] sm:$0xf0]  ;;  %v5402_v51 = vld [vmem:[#allocation11 + $0x1d4] sm:$0xf] }
 0x1ca   : > { %3149 = vmatpush.bf16.msrb.mxu0 %v4735_v47  ;;  %3162 = vmatpush.bf16.msrb.mxu1 %v4799_v49  ;;  %v6200_v59 = vpop.f32.mrf.mxu0  ;;  %v6202_v61 = vpop.f32.mrf.mxu1  ;;  %v4755_v49 = vor.u32 %v5348_v52, %v4752_v34 }
 0x1cb   : > { %v2521_v62 = vpop.f32.mrf.mxu2  ;;  %v2534_v63 = vpop.f32.mrf.mxu3 }
 0x1cc   : > { %3171 = vmatpush.bf16.msrb.mxu2 %v4895_v6  ;;  %v4880_v6 = vld [vmem:[#allocation11 + $0x128] sm:$0xf0] }
 0x1cd   : > { %3150 = vmatmul.bf16.vlgmr.msrb.gmra.mxu0 %v6197_v28  ;;  %v4883_v52 = vor.u32 %v5380_v5, %v4880_v6  ;;  %v5400_v5 = vld [vmem:[#allocation11 + $0x1c4] sm:$0xf]  ;;  %v4960_v6 = vld [vmem:[#allocation11 + $0x1c8] sm:$0xf0] }
 0x1ce   : > { %3194 = vmatpush.bf16.msra.mxu0 %v4795_v18  ;;  %3207 = vmatpush.bf16.msra.mxu1 %v4859_v19  ;;  %v5559_v7 = vpop.eup %5558  ;;  %v4819_v18 = vor.u32 %v5364_v11, %v4816_v14  ;;  %v5346_v19 = vld [vmem:[#allocation11 + $0x14] sm:$0xf] }
 0x1cf   : > { %v2749_v8 = vpack.c.bf16 %v5559_v7, %v5559_v7  ;;  %v4747_v26 = vor.u32 %v5346_v19, %v4744_v22  ;;  %v5378_v14 = vld [vmem:[#allocation11 + $0x114] sm:$0xf]  ;;  %v5405_v19 = vld [vmem:[#allocation11 + $0x1e4] sm:$0xf0] }
 0x1d0   : > { %3172 = vmatpush.bf16.msrb.mxu2 %v4887_v16  ;;  %v4875_v16 = vor.u32 %v5378_v14, %v4872_v15  ;;  %v4952_v14 = vld [vmem:[#allocation11 + $0x1b8] sm:$0xf0] }
 0x1d1   : > { %3163 = vmatmul.bf16.vlgmr.msrb.gmra.mxu1 %v2749_v8 }
 0x1d2   : > { %3195 = vmatpush.bf16.msra.mxu0 %v4787_v31  ;;  %3208 = vmatpush.bf16.msra.mxu1 %v4851_v32  ;;  %v2547_v2 = vpop.f32.mrf.mxu0  ;;  %v2560_v47 = vpop.f32.mrf.mxu1  ;;  %v4800_v31 = vld [vmem:[#allocation11 + $0x88] sm:$0xf0]  ;;  %v4871_v32 = vor.u32 %v5379_v25, %v4870_v36  ;;  %v4966_v36 = vld [vmem:[#allocation11 + $0x1d0] sm:$0xf]  ;;  %v5403_v25 = vld [vmem:[#allocation11 + $0x1d4] sm:$0xf0] }
 0x1d3   : > { %v4803_v9 = vor.u32 %v5360_v44, %v4800_v31  ;;  %v5401_v44 = vld [vmem:[#allocation11 + $0x1c4] sm:$0xf0] }
 0x1d4   : > { %3173 = vmatpush.bf16.msrb.mxu2 %v4879_v24  ;;  %v4959_v33 = vor.u32 %v5401_v44, %v4958_v27 }
 0x1d6   : > { %3196 = vmatpush.bf16.msra.mxu0 %v4779_v46  ;;  %3209 = vmatpush.bf16.msra.mxu1 %v4843_v50  ;;  %v5388_v50 = vld [vmem:[#allocation11 + $0x164] sm:$0xf] }
 0x1d7   : > { %v4915_v54 = vor.u32 %v5388_v50, %v4912_v53  ;;  %v4934_v53 = vld [vmem:[#allocation11 + $0x190] sm:$0xf] }
 0x1d8   : > { %3174 = vmatpush.bf16.msrb.mxu2 %v4871_v32 }
 0x1da   : > { %3197 = vmatpush.bf16.msra.mxu0 %v4771_v0  ;;  %3210 = vmatpush.bf16.msra.mxu1 %v4835_v1  ;;  %v5384_v0 = vld [vmem:[#allocation11 + $0x144] sm:$0xf]  ;;  %v4896_v1 = vld [vmem:[#allocation11 + $0x148] sm:$0xf0] }
 0x1db   : > { %v4899_v20 = vor.u32 %v5384_v0, %v4896_v1  ;;  %v5404_v0 = vld [vmem:[#allocation11 + $0x1e4] sm:$0xf]  ;;  %v4976_v1 = vld [vmem:[#allocation11 + $0x1e8] sm:$0xf0] }
 0x1dc   : > { %3175 = vmatpush.bf16.msrb.mxu2 %v4863_v42  ;;  %v4942_v42 = vld [vmem:[#allocation11 + $0x1a0] sm:$0xf] }
 0x1de   : > { %3198 = vmatpush.bf16.msra.mxu0 %v4763_v21  ;;  %3211 = vmatpush.bf16.msra.mxu1 %v4827_v10  ;;  %v4982_v21 = vld [vmem:[#allocation11 + $0x1f0] sm:$0xf]  ;;  %v5407_v10 = vld [vmem:[#allocation11 + $0x1f4] sm:$0xf0] }
 0x1df   : > { %v4983_v34 = vor.u32 %v5407_v10, %v4982_v21  ;;  %v4963_v21 = vor.u32 %v5400_v5, %v4960_v6  ;;  %v5421_v5 = vld [vmem:[#allocation13 + $0x68] sm:$0xff]  ;;  %v5408_v6 = vld [vmem:[#allocation13] sm:$0xff] }
 0x1e0   : > { %3220 = vmatpush.bf16.msra.mxu2 %v4923_v41  ;;  %v5397_v41 = vld [vmem:[#allocation11 + $0x1a4] sm:$0xf0] }
 0x1e1   : > { %3181 = vmatpush.bf16.msrb.mxu3 %v4983_v34  ;;  %v1043_v34 = vperm.slane %v6161_v45, 3 }
 0x1e2   : > { %3199 = vmatpush.bf16.msra.mxu0 %v4755_v49  ;;  %3212 = vmatpush.bf16.msra.mxu1 %v4819_v18  ;;  %v2584_v46 = vpop.f32.mrf.mxu3  ;;  %v4974_v18 = vld [vmem:[#allocation11 + $0x1e0] sm:$0xf] }
 0x1e3   : > { %v2571_v43 = vpop.f32.mrf.mxu2  ;;  %v4975_v30 = vor.u32 %v5405_v19, %v4974_v18  ;;  %v4936_v18 = vld [vmem:[#allocation11 + $0x198] sm:$0xf0]  ;;  %v5392_v19 = vld [vmem:[#allocation11 + $0x184] sm:$0xf] }
 0x1e4   : > { %3221 = vmatpush.bf16.msra.mxu2 %v4915_v54  ;;  %v5395_v54 = vld [vmem:[#allocation11 + $0x194] sm:$0xf0] }
 0x1e5   : > { %3182 = vmatpush.bf16.msrb.mxu3 %v4975_v30  ;;  %v4935_v55 = vor.u32 %v5395_v54, %v4934_v53  ;;  %v4928_v30 = vld [vmem:[#allocation11 + $0x188] sm:$0xf0] }
 0x1e6   : > { %3200 = vmatpush.bf16.msra.mxu0 %v4747_v26  ;;  %3213 = vmatpush.bf16.msra.mxu1 %v4811_v39  ;;  %v4967_v26 = vor.u32 %v5403_v25, %v4966_v36  ;;  %v4931_v45 = vor.u32 %v5392_v19, %v4928_v30 }
 0x1e8   : > { %3222 = vmatpush.bf16.msra.mxu2 %v4907_v56  ;;  %v5393_v56 = vld [vmem:[#allocation11 + $0x184] sm:$0xf0] }
 0x1e9   : > { %3183 = vmatpush.bf16.msrb.mxu3 %v4967_v26 }
 0x1ea   : > { %3201 = vmatpush.bf16.msra.mxu0 %v4739_v40  ;;  %3214 = vmatpush.bf16.msra.mxu1 %v4803_v9  ;;  %v2597_v57 = vpop.f32.mrf.mxu0  ;;  %v2610_v58 = vpop.f32.mrf.mxu1  ;;  %v4951_v9 = vor.u32 %v5399_v38, %v4950_v37 }
 0x1eb   : > { %v2573_v62 = vpop.f32.mrf.mxu2  ;;  %v2586_v63 = vpop.f32.mrf.mxu3 }
 0x1ec   : > { %3223 = vmatpush.bf16.msra.mxu2 %v4899_v20  ;;  %v4927_v62 = vor.u32 %v5393_v56, %v4926_v29  ;;  %v5415_v56 = vld [vmem:[#allocation13 + $0x38] sm:$0xff] }
 0x1ed   : > { %3202 = vmatmul.bf16.vlgmr.msra.gmra.mxu0 %v6197_v28  ;;  %3215 = vmatmul.bf16.vlgmr.msra.gmra.mxu1 %v2749_v8  ;;  %v2546_v28 = vadd.f32 %v6200_v59, %v1042_v12  ;;  %v4864_v59 = vld [vmem:[#allocation11 + $0x108] sm:$0xf0]  ;;  %v4979_v12 = vor.u32 %v5404_v0, %v4976_v1  ;;  %v5412_v0 = vld [vmem:[#allocation13 + $0x20] sm:$0xff]  ;;  %v5411_v1 = vld [vmem:[#allocation13 + $0x18] sm:$0xff] }
 0x1ee   : > { %v4867_v2 = vor.u32 %v5376_v60, %v4864_v59  ;;  %3184 = vmatpush.bf16.msrb.mxu3 %v4959_v33  ;;  %v4944_v60 = vld [vmem:[#allocation11 + $0x1a8] sm:$0xf0]  ;;  %v2816_v33 = vld [vmem:[%s6256_s6] sm:$0x3]  ;;  %3382 = vmatpush.bf16.msrb.mxu0 %v5415_v56 }
 0x1ef   : > { %v2559_v11 = vadd.f32 %v6202_v61, %v2546_v28  ;;  %v4968_v28 = vld [vmem:[#allocation11 + $0x1d8] sm:$0xf0]  ;;  %v2818_v37 = vperm.slane %v2816_v33, 0 }
 0x1f0   : > { %3224 = vmatpush.bf16.msra.mxu2 %v4891_v4  ;;  %v4971_v4 = vor.u32 %v5402_v51, %v4968_v28  ;;  %v5410_v51 = vld [vmem:[#allocation13 + $0x10] sm:$0xff] }
 0x1f1   : > { %v2572_v48 = vadd.f32 %v2571_v43, %v2559_v11  ;;  %v4943_v43 = vor.u32 %v5397_v41, %v4942_v42  ;;  %v5398_v11 = vld [vmem:[#allocation11 + $0x1b4] sm:$0xf] }
 0x1f2   : > { %v2599_v7 = vpop.f32.mrf.mxu0  ;;  %v2612_v8 = vpop.f32.mrf.mxu1  ;;  %3185 = vmatpush.bf16.msrb.mxu3 %v4951_v9  ;;  %v4955_v15 = vor.u32 %v5398_v11, %v4952_v14  ;;  %v5422_v28 = vld [vmem:[#allocation13 + $0x70] sm:$0xff] }
 0x1f3   : > { %v2585_v17 = vadd.f32 %v2584_v46, %v2572_v48 }
 0x1f4   : > { %3225 = vmatpush.bf16.msra.mxu2 %v4883_v52 }
 0x1f5   : > { %v2598_v47 = vadd.f32 %v2597_v57, %v2585_v17  ;;  %v5406_v57 = vld [vmem:[#allocation11 + $0x1f4] sm:$0xf] }
 0x1f6   : > { %3186 = vmatpush.bf16.msrb.mxu3 %v4943_v43  ;;  %v2819_v43 = vperm.slane %v2816_v33, 1 }
 0x1f7   : > { %v2611_v49 = vadd.f32 %v2610_v58, %v2598_v47  ;;  %v4984_v58 = vld [vmem:[#allocation11 + $0x1f8] sm:$0xf0] }
 0x1f8   : > { %3226 = vmatpush.bf16.msra.mxu2 %v4875_v16  ;;  %v4987_v63 = vor.u32 %v5406_v57, %v4984_v58  ;;  %v5396_v16 = vld [vmem:[#allocation11 + $0x1a4] sm:$0xf]  ;;  %v5423_v57 = vld [vmem:[#allocation13 + $0x78] sm:$0xff]  ;;  %v5414_v58 = vld [vmem:[#allocation13 + $0x30] sm:$0xff] }
 0x1f9   : > { %v4947_v59 = vor.u32 %v5396_v16, %v4944_v60  ;;  %3395 = vmatpush.bf16.msrb.mxu1 %v5423_v57  ;;  %3383 = vmatpush.bf16.msrb.mxu0 %v5414_v58 }
 0x1fa   : > { %3187 = vmatpush.bf16.msrb.mxu3 %v4935_v55 }
 0x1fc   : > { %3227 = vmatpush.bf16.msra.mxu2 %v4867_v2 }
 0x1fd   : > { %3396 = vmatpush.bf16.msrb.mxu1 %v5422_v28 }
 0x1fe   : > { %3188 = vmatpush.bf16.msrb.mxu3 %v4927_v62  ;;  %v5413_v62 = vld [vmem:[#allocation13 + $0x28] sm:$0xff] }
 0x1ff   : > { %3384 = vmatpush.bf16.msrb.mxu0 %v5413_v62 }
 0x201   : > { %3397 = vmatpush.bf16.msrb.mxu1 %v5421_v5 }
 0x202   : > { %v2636_v23 = vpop.f32.mrf.mxu3  ;;  %3233 = vmatpush.bf16.msra.mxu3 %v4987_v63 }
 0x203   : > { %v2623_v22 = vpop.f32.mrf.mxu2  ;;  %3385 = vmatpush.bf16.msrb.mxu0 %v5412_v0 }
 0x204   : > { %v2624_v61 = vadd.f32 %v2623_v22, %v2611_v49  ;;  %v5394_v49 = vld [vmem:[#allocation11 + $0x194] sm:$0xf] }
 0x206   : > { %v2637_v24 = vadd.f32 %v2636_v23, %v2624_v61  ;;  %3234 = vmatpush.bf16.msra.mxu3 %v4979_v12  ;;  %v4939_v23 = vor.u32 %v5394_v49, %v4936_v18 }
 0x207   : > { %3386 = vmatpush.bf16.msrb.mxu0 %v5411_v1 }
 0x208   : > { %5560 = vtanh.f32 %v2637_v24 }
 0x20a   : > { %v2649_v39 = vpop.f32.mrf.mxu0  ;;  %v2662_v3 = vpop.f32.mrf.mxu1  ;;  %3235 = vmatpush.bf16.msra.mxu3 %v4971_v4  ;;  %v5409_v4 = vld [vmem:[#allocation13 + $0x8] sm:$0xff] }
 0x20b   : > { %v2625_v31 = vpop.f32.mrf.mxu2  ;;  %v2638_v32 = vpop.f32.mrf.mxu3  ;;  %v2650_v48 = vadd.f32 %v2649_v39, %v1043_v34  ;;  %3387 = vmatpush.bf16.msrb.mxu0 %v5410_v51 }
 0x20d   : > { %v2663_v47 = vadd.f32 %v2662_v3, %v2650_v48 }
 0x20e   : > { %v5561_v35 = vpop.eup %5560  ;;  %3236 = vmatpush.bf16.msra.mxu3 %v4963_v21  ;;  %v5418_v21 = vld [vmem:[#allocation13 + $0x50] sm:$0xff] }
 0x20f   : > { %v2750_v40 = vpack.c.bf16 %v5561_v35, %v5561_v35  ;;  %3388 = vmatpush.bf16.msrb.mxu0 %v5409_v4 }
 0x211   : > { %3176 = vmatmul.bf16.vlgmr.msrb.gmra.mxu2 %v2750_v40 }
 0x212   : > { %v2651_v46 = vpop.f32.mrf.mxu0  ;;  %v2664_v50 = vpop.f32.mrf.mxu1  ;;  %3237 = vmatpush.bf16.msra.mxu3 %v4955_v15 }
 0x213   : > { %3389 = vmatpush.bf16.msrb.mxu0 %v5408_v6 }
 0x216   : > { %3238 = vmatpush.bf16.msra.mxu3 %v4947_v59 }
 0x21a   : > { %3239 = vmatpush.bf16.msra.mxu3 %v4939_v23 }
 0x21e   : > { %3240 = vmatpush.bf16.msra.mxu3 %v4931_v45 }
 0x221   : > { %3228 = vmatmul.bf16.vlgmr.msra.gmra.mxu2 %v2750_v40 }
 0x222   : > { %v2688_v13 = vpop.f32.mrf.mxu3 }
 0x223   : > { %v2675_v20 = vpop.f32.mrf.mxu2 }
 0x224   : > { %v2676_v22 = vadd.f32 %v2675_v20, %v2663_v47 }
 0x226   : > { %v2689_v61 = vadd.f32 %v2688_v13, %v2676_v22  ;;  %v5539_v22 = vld [vmem:[%s6258_s8] ss:$0 sm:$0xff] }
 0x22a   : > { %v2701_v7 = vpop.f32.mrf.mxu0  ;;  %v2714_v8 = vpop.f32.mrf.mxu1 }
 0x22b   : > { %v2677_v10 = vpop.f32.mrf.mxu2  ;;  %v2690_v52 = vpop.f32.mrf.mxu3  ;;  %v2702_v24 = vadd.f32 %v2701_v7, %v2689_v61  ;;  %v5420_v7 = vld [vmem:[#allocation13 + $0x60] sm:$0xff] }
 0x22c   : > { %3398 = vmatpush.bf16.msrb.mxu1 %v5420_v7  ;;  %v5417_v10 = vld [vmem:[#allocation13 + $0x48] sm:$0xff]  ;;  %v5416_v52 = vld [vmem:[#allocation13 + $0x40] sm:$0xff] }
 0x22d   : > { %v2715_v36 = vadd.f32 %v2714_v8, %v2702_v24  ;;  %v5419_v8 = vld [vmem:[#allocation13 + $0x58] sm:$0xff] }
 0x230   : > { %3399 = vmatpush.bf16.msrb.mxu1 %v5419_v8 }
 0x232   : > { %v2703_v17 = vpop.f32.mrf.mxu0  ;;  %v2716_v2 = vpop.f32.mrf.mxu1 }
 0x234   : > { %3400 = vmatpush.bf16.msrb.mxu1 %v5418_v21 }
 0x238   : > { %3401 = vmatpush.bf16.msrb.mxu1 %v5417_v10 }
 0x23c   : > { %3402 = vmatpush.bf16.msrb.mxu1 %v5416_v52 }
 0x242   : > { %v2727_v25 = vpop.f32.mrf.mxu2  ;;  %v2740_v26 = vpop.f32.mrf.mxu3 }
 0x243   : > { %v2728_v39 = vadd.f32 %v2727_v25, %v2715_v36 }
 0x245   : > { %v2741_v27 = vadd.f32 %v2740_v26, %v2728_v39 }
 0x247   : > { %5562 = vtanh.f32 %v2741_v27 }
 0x24a   : > { %v3151_v44 = vpop.f32.mrf.mxu0  ;;  %v2729_v3 = vpop.f32.mrf.mxu2 }
 0x24b   : > { %v2742_v31 = vpop.f32.mrf.mxu3  ;;  %v3152_v40 = vadd.f32 %v3151_v44, %v2818_v37 }
 0x24d   : > { %v5563_v32 = vpop.eup %5562 }
 0x24e   : > { %v2751_v35 = vpack.c.bf16 %v5563_v32, %v5563_v32  ;;  %v3164_v9 = vpop.f32.mrf.mxu1 }
 0x24f   : > { %v3165_v42 = vadd.f32 %v3164_v9, %v3152_v40 }
 0x250   : > { %3189 = vmatmul.bf16.vlgmr.msrb.gmra.mxu3 %v2751_v35 }
 0x252   : > { %v3153_v38 = vpop.f32.mrf.mxu0 }
 0x256   : > { %v3166_v41 = vpop.f32.mrf.mxu1 }
 0x260   : > { %3241 = vmatmul.bf16.vlgmr.msra.gmra.mxu3 %v2751_v35 }
 0x26a   : > { %v3203_v46 = vpop.f32.mrf.mxu0  ;;  %v3216_v50 = vpop.f32.mrf.mxu1 }
 0x26b   : > { %v3204_v53 = vadd.f32 %v3203_v46, %v2819_v43 }
 0x26d   : > { %v3217_v54 = vadd.f32 %v3216_v50, %v3204_v53 }
 0x272   : > { %v3205_v55 = vpop.f32.mrf.mxu0  ;;  %v3218_v29 = vpop.f32.mrf.mxu1 }
 0x294   : > { %v3177_v63 = vpop.f32.mrf.mxu2 }
 0x295   : > { %v3178_v34 = vadd.f32 %v3177_v63, %v3165_v42 }
 0x29c   : > { %v3179_v12 = vpop.f32.mrf.mxu2 }
 0x2a4   : > { %v3229_v20 = vpop.f32.mrf.mxu2 }
 0x2a5   : > { %v3230_v60 = vadd.f32 %v3229_v20, %v3217_v54 }
 0x2ac   : > { %v3231_v13 = vpop.f32.mrf.mxu2 }
 0x2d3   : > { %v3190_v11 = vpop.f32.mrf.mxu3 }
 0x2d4   : > { %v3191_v14 = vadd.f32 %v3190_v11, %v3178_v34 }
 0x2d6   : > { %5564 = vtanh.f32 %v3191_v14 }
 0x2db   : > { %v3192_v15 = vpop.f32.mrf.mxu3 }
 0x2dc   : > { %v5565_v48 = vpop.eup %5564 }
 0x2dd   : > { %v3248_v16 = vpack.c.bf16 %v5565_v48, %v5565_v48 }
 0x2df   : > { %3390 = vmatmul.bf16.vlgmr.msrb.gmra.mxu0 %v3248_v16 }
 0x2e3   : > { %v3242_v59 = vpop.f32.mrf.mxu3 }
 0x2e4   : > { %v3243_v17 = vadd.f32 %v3242_v59, %v3230_v60 }
 0x2e6   : > { %5566 = vtanh.f32 %v3243_v17 }
 0x2eb   : > { %v3244_v2 = vpop.f32.mrf.mxu3 }
 0x2ec   : > { %v5567_v47 = vpop.eup %5566 }
 0x2ed   : > { %v3249_v49 = vpack.c.bf16 %v5567_v47, %v5567_v47 }
 0x2ef   : > { %3403 = vmatmul.bf16.vlgmr.msrb.gmra.mxu1 %v3249_v49 }
 0x35c   : > { %v3391_v18 = vpop.f32.mrf.mxu0 }
 0x35d   : > { %v3392_v23 = vadd.f32 %v5539_v22, %v3391_v18 }
 0x364   : > { %v3393_v19 = vpop.f32.mrf.mxu0 }
 0x36c   : > { %v3404_v30 = vpop.f32.mrf.mxu1 }
 0x36d   : > { %v3405_v45 = vadd.f32 %v3404_v30, %v3392_v23 }
 0x36f   : > { %3408 = vst [vmem:[%s444_s14] sm:$0xff] %v3405_v45 }
 0x370   : > { %5805 = shalt.err (!%p5802_p9)
}
 0x371   : > { %5450 = dma.vmem_to_hbm [thread:$0]  (%p6019_p4), %s3423_s18, 128, %s3425_s20, %s3410_s16  }
 0x374   : > { %v3406_v61 = vpop.f32.mrf.mxu1 }
 0x375 PF: > { %s3436_s28 = sand.u32 1, %s5844_s30   ;;  %p6275_p10 = scmp.ge.s32.totalorder %s5856_s12, 2 }
 0x376   : > { %s3437_s24 = scalar_lea.sflag [#allocation4], %s3436_s28 }
 0x377   : > { %p5476_p13 = pnand %p6275_p10, %p6023_p6 }
 0x379   : > { %p5477_p11 = pneg %p5476_p13 }
 0x37b   : > { %5839 = dma.done.wait (%p5477_p11), %s3437_s24, 128  }
 0x37c   : > { %5841 = vsyncadd (%p5477_p11), %s3437_s24, 4294967168  ;;  %p25_p0 = scmp.ge.s32.totalorder %s5993_s19, 4   ;;  %s6276_s30 = smov %s5848_s10 }
 0x37d   : > { %s6277_s10 = smov %s5852_s11  ;;  %s6278_s11 = smov %s6004_s26 }
 0x37e   : > { %s6279_s12 = smov %s5993_s19  ;;  %27 = sbr.rel (!%p25_p0) target bundleno = 13 (0xd), region = 125 }
 0x383   :  { %3443 = vsyncpa [#allocation3], 1 }
 0x384   :  { %3445 = vsyncpa [#allocation3 + $0x1], 1 }
 0x385   :  { %3446 = vsyncpa [#allocation6], 1 }
 0x386   :  { %3447 = vsyncpa [#allocation9], 1 }
 0x387   :  { %3448 = vsyncpa [#allocation12], 1 }
 0x388   :  { %3449 = vsyncpa [#allocation4], 1 }
 0x389   :  { %3451 = vsyncpa [#allocation4 + $0x1], 1 }

</bundles_post_ra>
